<compile_context>
chip_gen: v6e
topology: v6e:2x2x1
jax: 0.10.0
libtpu: 0.0.40
codegen_flags: <defaults>
</compile_context>

<pallas_src>
import jax
import jax.numpy as jnp
from jax.experimental import pallas as pl
from jax.experimental.pallas import tpu as pltpu


# ------------------------------ kernel helpers ------------------------------ #

def _leaky_relu(x):
    return jnp.where(x >= 0.0, x, 0.2 * x)


def _conv_taps(src_ref, w_ref, b_ref, H, W, k, d):
    """Conv2d as a sum of k*k shifted-tap matmuls, accumulated in f32.

    src_ref: (H + d*(k-1), W + d*(k-1), Cin) zero-padded NHWC plane (VMEM ref)
    w_ref  : (k*k, Cin, N) tap-major fused weights (VMEM ref)
    b_ref  : (1, N) fused bias (VMEM ref)
    returns: (H*W, N) float32
    """
    n = w_ref.shape[-1]
    acc = jnp.zeros((H * W, n), jnp.float32) + b_ref[...]          # bias folded in
    for i in range(k):
        for j in range(k):
            tap = src_ref[pl.ds(i * d, H), pl.ds(j * d, W), :]     # (H, W, Cin)
            acc = acc + jnp.dot(tap.reshape(H * W, tap.shape[-1]),
                                w_ref[i * k + j],
                                preferred_element_type=jnp.float32)
    return acc


def _make_init_kernel(H, W, k, d, C):
    """h is None branch: h = leaky_relu(sigmoid(conv_xz(x)) * tanh(conv_xn(x)))."""
    def kernel(x_ref, w_ref, b_ref, o_ref):
        zn = _conv_taps(x_ref, w_ref, b_ref, H, W, k, d)           # (H*W, 2C)
        h = jax.nn.sigmoid(zn[:, :C]) * jnp.tanh(zn[:, C:])
        o_ref[...] = _leaky_relu(h)
    return kernel


def _make_step_kernel(H, W, k, d, C):
    """Recurrent branch: full GRU update fused into one kernel."""
    ph = (k - 1) // 2
    def kernel(x_ref, h_ref, wx_ref, bx_ref, whzr_ref, bhzr_ref,
               whn_ref, bhn_ref, o_ref, rh_ref):
        xzrn = _conv_taps(x_ref, wx_ref, bx_ref, H, W, k, d)       # (H*W, 3C)
        hzr = _conv_taps(h_ref, whzr_ref, bhzr_ref, H, W, k, 1)    # (H*W, 2C)
        z = jax.nn.sigmoid(xzrn[:, :C] + hzr[:, :C])
        r = jax.nn.sigmoid(xzrn[:, C:2 * C] + hzr[:, C:])
        h_prev = h_ref[pl.ds(ph, H), pl.ds(ph, W), :].reshape(H * W, C)
        # zero-padded r*h staged through a small VMEM scratch for the conv_hn taps
        rh_ref[...] = jnp.zeros_like(rh_ref)
        rh_ref[pl.ds(ph, H), pl.ds(ph, W), :] = (r * h_prev).reshape(H, W, C)
        hn = _conv_taps(rh_ref, whn_ref, bhn_ref, H, W, k, 1)      # (H*W, C)
        n = jnp.tanh(xzrn[:, 2 * C:] + hn)
        h_new = (1.0 - z) * h_prev + z * n
        o_ref[...] = _leaky_relu(h_new)
    return kernel


# --------------------------------- wrapper ----------------------------------- #

class ConvGRUPallas:
    """Mirrors torch ConvGRU(inp_dim, oup_dim, kernel, dilation).forward (odd kernel)."""

    def __init__(self, inp_dim, oup_dim, kernel, dilation, key):
        self.inp_dim, self.oup_dim = inp_dim, oup_dim
        self.kernel, self.dilation = kernel, dilation
        names = ["xz", "xr", "xn", "hz", "hr", "hn"]
        cins = [inp_dim] * 3 + [oup_dim] * 3
        keys = jax.random.split(key, 2 * len(names))
        self.w, self.b = {}, {}
        for idx, (name, cin) in enumerate(zip(names, cins)):
            fan_in = cin * kernel * kernel
            bound = fan_in ** -0.5  # PyTorch Conv2d default init bound
            # weights stored in im2col layout (kh*kw*cin, cout) for the reference
            self.w[name] = jax.random.uniform(
                keys[2 * idx], (kernel * kernel * cin, oup_dim),
                jnp.float32, -bound, bound)
            self.b[name] = jax.random.uniform(
                keys[2 * idx + 1], (oup_dim,), jnp.float32, -bound, bound)

        kk, C = kernel * kernel, oup_dim
        # fused, tap-major weights for the Pallas kernels: (k*k, Cin, N)
        self.w_x2 = jnp.concatenate([self.w["xz"], self.w["xn"]], 1).reshape(
            kk, inp_dim, 2 * C)
        self.b_x2 = jnp.concatenate([self.b["xz"], self.b["xn"]]).reshape(1, 2 * C)
        self.w_x3 = jnp.concatenate(
            [self.w["xz"], self.w["xr"], self.w["xn"]], 1).reshape(kk, inp_dim, 3 * C)
        self.b_x3 = jnp.concatenate(
            [self.b["xz"], self.b["xr"], self.b["xn"]]).reshape(1, 3 * C)
        self.w_hzr = jnp.concatenate([self.w["hz"], self.w["hr"]], 1).reshape(
            kk, C, 2 * C)
        self.b_hzr = jnp.concatenate([self.b["hz"], self.b["hr"]]).reshape(1, 2 * C)
        self.w_hn = self.w["hn"].reshape(kk, C, C)
        self.b_hn = self.b["hn"].reshape(1, C)

    @staticmethod
    def _full_spec(arr):
        nd = arr.ndim
        return pl.BlockSpec(arr.shape, lambda b, _nd=nd: (0,) * _nd)

    def __call__(self, x_nchw, h_nchw=None):
        B, _, H, W = x_nchw.shape
        C, k, d = self.oup_dim, self.kernel, self.dilation
        pad_x = d * (k - 1) // 2     # matches torch int(dilation*(kernel-1)/2), odd k
        pad_h = (k - 1) // 2

        x = jnp.transpose(x_nchw, (0, 2, 3, 1))                      # NCHW -> NHWC
        xp = jnp.pad(x, ((0, 0), (pad_x, pad_x), (pad_x, pad_x), (0, 0)))
        x_spec = pl.BlockSpec((None,) + xp.shape[1:], lambda b: (b, 0, 0, 0))
        out_spec = pl.BlockSpec((None, H * W, C), lambda b: (b, 0, 0))
        cparams = pltpu.CompilerParams(
            dimension_semantics=("parallel",),        # v7x: both TCs when B >= 2
            vmem_limit_bytes=32 * 1024 * 1024)        # safe on v5e/v6e/v7x

        if h_nchw is None:
            out = pl.pallas_call(
                _make_init_kernel(H, W, k, d, C),
                out_shape=jax.ShapeDtypeStruct((B, H * W, C), jnp.float32),
                grid_spec=pltpu.PrefetchScalarGridSpec(
                    num_scalar_prefetch=0,
                    grid=(B,),
                    in_specs=[x_spec,
                              self._full_spec(self.w_x2),
                              self._full_spec(self.b_x2)],
                    out_specs=out_spec),
                compiler_params=cparams,
            )(xp, self.w_x2, self.b_x2)
        else:
            h = jnp.transpose(h_nchw, (0, 2, 3, 1))
            hp = jnp.pad(h, ((0, 0), (pad_h, pad_h), (pad_h, pad_h), (0, 0)))
            h_spec = pl.BlockSpec((None,) + hp.shape[1:], lambda b: (b, 0, 0, 0))
            out = pl.pallas_call(
                _make_step_kernel(H, W, k, d, C),
                out_shape=jax.ShapeDtypeStruct((B, H * W, C), jnp.float32),
                grid_spec=pltpu.PrefetchScalarGridSpec(
                    num_scalar_prefetch=0,
                    grid=(B,),
                    in_specs=[x_spec, h_spec,
                              self._full_spec(self.w_x3), self._full_spec(self.b_x3),
                              self._full_spec(self.w_hzr), self._full_spec(self.b_hzr),
                              self._full_spec(self.w_hn), self._full_spec(self.b_hn)],
                    out_specs=out_spec,
                    scratch_shapes=[pltpu.VMEM(
                        (H + 2 * pad_h, W + 2 * pad_h, C), jnp.float32)]),
                compiler_params=cparams,
            )(xp, hp, self.w_x3, self.b_x3, self.w_hzr, self.b_hzr,
              self.w_hn, self.b_hn)

        h_out = jnp.transpose(out.reshape(B, H, W, C), (0, 3, 1, 2))  # back to NCHW
        return h_out, h_out


# ----------------------------- pure-JAX reference ---------------------------- #

def _ref_conv(x_nhwc, w_flat, b, k, cin, dilation):
    w = w_flat.reshape(k, k, cin, -1)                    # HWIO
    pad = dilation * (k - 1) // 2
    out = jax.lax.conv_general_dilated(
        x_nhwc, w, window_strides=(1, 1),
        padding=[(pad, pad), (pad, pad)],
        rhs_dilation=(dilation, dilation),
        dimension_numbers=("NHWC", "HWIO", "NHWC"))
    return out + b


def ref_forward(gru, x_nchw, h_nchw):
    k, d, C, cin = gru.kernel, gru.dilation, gru.oup_dim, gru.inp_dim
    x = jnp.transpose(x_nchw, (0, 2, 3, 1))
    xz = _ref_conv(x, gru.w["xz"], gru.b["xz"], k, cin, d)
    xr = _ref_conv(x, gru.w["xr"], gru.b["xr"], k, cin, d)
    xn = _ref_conv(x, gru.w["xn"], gru.b["xn"], k, cin, d)
    if h_nchw is None:
        h = jax.nn.sigmoid(xz) * jnp.tanh(xn)
    else:
        hp = jnp.transpose(h_nchw, (0, 2, 3, 1))
        hz = _ref_conv(hp, gru.w["hz"], gru.b["hz"], k, C, 1)
        hr = _ref_conv(hp, gru.w["hr"], gru.b["hr"], k, C, 1)
        z = jax.nn.sigmoid(xz + hz)
        r = jax.nn.sigmoid(xr + hr)
        hn = _ref_conv(r * hp, gru.w["hn"], gru.b["hn"], k, C, 1)
        n = jnp.tanh(xn + hn)
        h = (1 - z) * hp + z * n
    h = jnp.where(h >= 0, h, 0.2 * h)
    return jnp.transpose(h, (0, 3, 1, 2))


# ---------------------------------- main ------------------------------------- #

if __name__ == "__main__":
    key = jax.random.PRNGKey(0)
    kp, kx1, kx2 = jax.random.split(key, 3)
    inp_dim, oup_dim, kernel, dilation = 4, 8, 3, 2
    B, H, W = 2, 16, 16

    gru = ConvGRUPallas(inp_dim, oup_dim, kernel, dilation, kp)
    x1 = jax.random.normal(kx1, (B, inp_dim, H, W), jnp.float32)
    x2 = jax.random.normal(kx2, (B, inp_dim, H, W), jnp.float32)

    h1, _ = gru(x1)          # h is None branch (fused init kernel)
    h2, _ = gru(x2, h1)      # recurrent branch (fused step kernel)
    jax.block_until_ready((h1, h2))

    r1 = ref_forward(gru, x1, None)
    r2 = ref_forward(gru, x2, r1)
    assert h1.shape == (B, oup_dim, H, W) and h2.shape == (B, oup_dim, H, W)
    assert jnp.allclose(h1, r1, atol=1e-4, rtol=1e-4)
    assert jnp.allclose(h2, r2, atol=1e-4, rtol=1e-4)
    print("KERNEL_OK")
</pallas_src>

<mosaic_0001>
module attributes {stable_mosaic.version = 11 : i64} {
  func.func @kernel(%arg0: i32, %arg1: memref<1x20x20x4xf32, #tpu.memory_space<vmem>>, %arg2: memref<9x4x16xf32, #tpu.memory_space<vmem>>, %arg3: memref<1x16xf32, #tpu.memory_space<vmem>>, %arg4: memref<1x256x8xf32, #tpu.memory_space<vmem>>) attributes {dimension_semantics = [#tpu.dimension_semantics<parallel>], iteration_bounds = array<i64: 2>, scalar_prefetch = 0 : i64, scratch_operands = 0 : i64, tpu.core_type = #tpu.core_type<tc>, window_params = [{transform_indices = @transform_0, window_bounds = array<i64: 1, 20, 20, 4>}, {pipeline_mode = #tpu.pipeline_mode<synchronous>, transform_indices = @transform_1, window_bounds = array<i64: 9, 4, 16>}, {pipeline_mode = #tpu.pipeline_mode<synchronous>, transform_indices = @transform_2, window_bounds = array<i64: 1, 16>}, {transform_indices = @transform_3, window_bounds = array<i64: 1, 256, 8>}]} {
    %cst = arith.constant 0.000000e+00 : f32
    %0 = vector.broadcast %cst : f32 to vector<256x16xf32>
    %c0 = arith.constant 0 : index
    %c0_0 = arith.constant 0 : index
    %1 = vector.load %arg3[%c0, %c0_0] : memref<1x16xf32, #tpu.memory_space<vmem>>, vector<1x16xf32>
    %2 = vector.broadcast %1 : vector<1x16xf32> to vector<256x16xf32>
    %3 = arith.addf %0, %2 : vector<256x16xf32>
    %c0_1 = arith.constant 0 : index
    %c0_2 = arith.constant 0 : index
    %c0_3 = arith.constant 0 : index
    %c0_4 = arith.constant 0 : index
    %4 = vector.load %arg1[%c0_1, %c0_2, %c0_3, %c0_4] : memref<1x20x20x4xf32, #tpu.memory_space<vmem>>, vector<1x16x16x4xf32>
    %5 = vector.shape_cast %4 : vector<1x16x16x4xf32> to vector<16x16x4xf32>
    %6 = vector.shape_cast %5 : vector<16x16x4xf32> to vector<256x4xf32>
    %c0_5 = arith.constant 0 : index
    %c0_6 = arith.constant 0 : index
    %c0_7 = arith.constant 0 : index
    %7 = vector.load %arg2[%c0_5, %c0_6, %c0_7] : memref<9x4x16xf32, #tpu.memory_space<vmem>>, vector<1x4x16xf32>
    %8 = vector.shape_cast %7 : vector<1x4x16xf32> to vector<4x16xf32>
    %cst_8 = arith.constant dense<0.000000e+00> : vector<256x16xf32>
    %9 = tpu.matmul %6, %8, %cst_8 {dimension_numbers = #tpu.dot_dimension_numbers<[1], [0], [0], [1], [0, 0, 1, 1], [], []>} : vector<256x4xf32>, vector<4x16xf32>, vector<256x16xf32> -> vector<256x16xf32>
    %10 = arith.addf %3, %9 : vector<256x16xf32>
    %c0_9 = arith.constant 0 : index
    %c0_10 = arith.constant 0 : index
    %c2 = arith.constant 2 : index
    %c0_11 = arith.constant 0 : index
    %11 = vector.load %arg1[%c0_9, %c0_10, %c2, %c0_11] : memref<1x20x20x4xf32, #tpu.memory_space<vmem>>, vector<1x16x16x4xf32>
    %12 = vector.shape_cast %11 : vector<1x16x16x4xf32> to vector<16x16x4xf32>
    %13 = vector.shape_cast %12 : vector<16x16x4xf32> to vector<256x4xf32>
    %c1 = arith.constant 1 : index
    %c0_12 = arith.constant 0 : index
    %c0_13 = arith.constant 0 : index
    %14 = vector.load %arg2[%c1, %c0_12, %c0_13] : memref<9x4x16xf32, #tpu.memory_space<vmem>>, vector<1x4x16xf32>
    %15 = vector.shape_cast %14 : vector<1x4x16xf32> to vector<4x16xf32>
    %cst_14 = arith.constant dense<0.000000e+00> : vector<256x16xf32>
    %16 = tpu.matmul %13, %15, %cst_14 {dimension_numbers = #tpu.dot_dimension_numbers<[1], [0], [0], [1], [0, 0, 1, 1], [], []>} : vector<256x4xf32>, vector<4x16xf32>, vector<256x16xf32> -> vector<256x16xf32>
    %17 = arith.addf %10, %16 : vector<256x16xf32>
    %c0_15 = arith.constant 0 : index
    %c0_16 = arith.constant 0 : index
    %c4 = arith.constant 4 : index
    %c0_17 = arith.constant 0 : index
    %18 = vector.load %arg1[%c0_15, %c0_16, %c4, %c0_17] : memref<1x20x20x4xf32, #tpu.memory_space<vmem>>, vector<1x16x16x4xf32>
    %19 = vector.shape_cast %18 : vector<1x16x16x4xf32> to vector<16x16x4xf32>
    %20 = vector.shape_cast %19 : vector<16x16x4xf32> to vector<256x4xf32>
    %c2_18 = arith.constant 2 : index
    %c0_19 = arith.constant 0 : index
    %c0_20 = arith.constant 0 : index
    %21 = vector.load %arg2[%c2_18, %c0_19, %c0_20] : memref<9x4x16xf32, #tpu.memory_space<vmem>>, vector<1x4x16xf32>
    %22 = vector.shape_cast %21 : vector<1x4x16xf32> to vector<4x16xf32>
    %cst_21 = arith.constant dense<0.000000e+00> : vector<256x16xf32>
    %23 = tpu.matmul %20, %22, %cst_21 {dimension_numbers = #tpu.dot_dimension_numbers<[1], [0], [0], [1], [0, 0, 1, 1], [], []>} : vector<256x4xf32>, vector<4x16xf32>, vector<256x16xf32> -> vector<256x16xf32>
    %24 = arith.addf %17, %23 : vector<256x16xf32>
    %c0_22 = arith.constant 0 : index
    %c2_23 = arith.constant 2 : index
    %c0_24 = arith.constant 0 : index
    %c0_25 = arith.constant 0 : index
    %25 = vector.load %arg1[%c0_22, %c2_23, %c0_24, %c0_25] : memref<1x20x20x4xf32, #tpu.memory_space<vmem>>, vector<1x16x16x4xf32>
    %26 = vector.shape_cast %25 : vector<1x16x16x4xf32> to vector<16x16x4xf32>
    %27 = vector.shape_cast %26 : vector<16x16x4xf32> to vector<256x4xf32>
    %c3 = arith.constant 3 : index
    %c0_26 = arith.constant 0 : index
    %c0_27 = arith.constant 0 : index
    %28 = vector.load %arg2[%c3, %c0_26, %c0_27] : memref<9x4x16xf32, #tpu.memory_space<vmem>>, vector<1x4x16xf32>
    %29 = vector.shape_cast %28 : vector<1x4x16xf32> to vector<4x16xf32>
    %cst_28 = arith.constant dense<0.000000e+00> : vector<256x16xf32>
    %30 = tpu.matmul %27, %29, %cst_28 {dimension_numbers = #tpu.dot_dimension_numbers<[1], [0], [0], [1], [0, 0, 1, 1], [], []>} : vector<256x4xf32>, vector<4x16xf32>, vector<256x16xf32> -> vector<256x16xf32>
    %31 = arith.addf %24, %30 : vector<256x16xf32>
    %c0_29 = arith.constant 0 : index
    %c2_30 = arith.constant 2 : index
    %c2_31 = arith.constant 2 : index
    %c0_32 = arith.constant 0 : index
    %32 = vector.load %arg1[%c0_29, %c2_30, %c2_31, %c0_32] : memref<1x20x20x4xf32, #tpu.memory_space<vmem>>, vector<1x16x16x4xf32>
    %33 = vector.shape_cast %32 : vector<1x16x16x4xf32> to vector<16x16x4xf32>
    %34 = vector.shape_cast %33 : vector<16x16x4xf32> to vector<256x4xf32>
    %c4_33 = arith.constant 4 : index
    %c0_34 = arith.constant 0 : index
    %c0_35 = arith.constant 0 : index
    %35 = vector.load %arg2[%c4_33, %c0_34, %c0_35] : memref<9x4x16xf32, #tpu.memory_space<vmem>>, vector<1x4x16xf32>
    %36 = vector.shape_cast %35 : vector<1x4x16xf32> to vector<4x16xf32>
    %cst_36 = arith.constant dense<0.000000e+00> : vector<256x16xf32>
    %37 = tpu.matmul %34, %36, %cst_36 {dimension_numbers = #tpu.dot_dimension_numbers<[1], [0], [0], [1], [0, 0, 1, 1], [], []>} : vector<256x4xf32>, vector<4x16xf32>, vector<256x16xf32> -> vector<256x16xf32>
    %38 = arith.addf %31, %37 : vector<256x16xf32>
    %c0_37 = arith.constant 0 : index
    %c2_38 = arith.constant 2 : index
    %c4_39 = arith.constant 4 : index
    %c0_40 = arith.constant 0 : index
    %39 = vector.load %arg1[%c0_37, %c2_38, %c4_39, %c0_40] : memref<1x20x20x4xf32, #tpu.memory_space<vmem>>, vector<1x16x16x4xf32>
    %40 = vector.shape_cast %39 : vector<1x16x16x4xf32> to vector<16x16x4xf32>
    %41 = vector.shape_cast %40 : vector<16x16x4xf32> to vector<256x4xf32>
    %c5 = arith.constant 5 : index
    %c0_41 = arith.constant 0 : index
    %c0_42 = arith.constant 0 : index
    %42 = vector.load %arg2[%c5, %c0_41, %c0_42] : memref<9x4x16xf32, #tpu.memory_space<vmem>>, vector<1x4x16xf32>
    %43 = vector.shape_cast %42 : vector<1x4x16xf32> to vector<4x16xf32>
    %cst_43 = arith.constant dense<0.000000e+00> : vector<256x16xf32>
    %44 = tpu.matmul %41, %43, %cst_43 {dimension_numbers = #tpu.dot_dimension_numbers<[1], [0], [0], [1], [0, 0, 1, 1], [], []>} : vector<256x4xf32>, vector<4x16xf32>, vector<256x16xf32> -> vector<256x16xf32>
    %45 = arith.addf %38, %44 : vector<256x16xf32>
    %c0_44 = arith.constant 0 : index
    %c4_45 = arith.constant 4 : index
    %c0_46 = arith.constant 0 : index
    %c0_47 = arith.constant 0 : index
    %46 = vector.load %arg1[%c0_44, %c4_45, %c0_46, %c0_47] : memref<1x20x20x4xf32, #tpu.memory_space<vmem>>, vector<1x16x16x4xf32>
    %47 = vector.shape_cast %46 : vector<1x16x16x4xf32> to vector<16x16x4xf32>
    %48 = vector.shape_cast %47 : vector<16x16x4xf32> to vector<256x4xf32>
    %c6 = arith.constant 6 : index
    %c0_48 = arith.constant 0 : index
    %c0_49 = arith.constant 0 : index
    %49 = vector.load %arg2[%c6, %c0_48, %c0_49] : memref<9x4x16xf32, #tpu.memory_space<vmem>>, vector<1x4x16xf32>
    %50 = vector.shape_cast %49 : vector<1x4x16xf32> to vector<4x16xf32>
    %cst_50 = arith.constant dense<0.000000e+00> : vector<256x16xf32>
    %51 = tpu.matmul %48, %50, %cst_50 {dimension_numbers = #tpu.dot_dimension_numbers<[1], [0], [0], [1], [0, 0, 1, 1], [], []>} : vector<256x4xf32>, vector<4x16xf32>, vector<256x16xf32> -> vector<256x16xf32>
    %52 = arith.addf %45, %51 : vector<256x16xf32>
    %c0_51 = arith.constant 0 : index
    %c4_52 = arith.constant 4 : index
    %c2_53 = arith.constant 2 : index
    %c0_54 = arith.constant 0 : index
    %53 = vector.load %arg1[%c0_51, %c4_52, %c2_53, %c0_54] : memref<1x20x20x4xf32, #tpu.memory_space<vmem>>, vector<1x16x16x4xf32>
    %54 = vector.shape_cast %53 : vector<1x16x16x4xf32> to vector<16x16x4xf32>
    %55 = vector.shape_cast %54 : vector<16x16x4xf32> to vector<256x4xf32>
    %c7 = arith.constant 7 : index
    %c0_55 = arith.constant 0 : index
    %c0_56 = arith.constant 0 : index
    %56 = vector.load %arg2[%c7, %c0_55, %c0_56] : memref<9x4x16xf32, #tpu.memory_space<vmem>>, vector<1x4x16xf32>
    %57 = vector.shape_cast %56 : vector<1x4x16xf32> to vector<4x16xf32>
    %cst_57 = arith.constant dense<0.000000e+00> : vector<256x16xf32>
    %58 = tpu.matmul %55, %57, %cst_57 {dimension_numbers = #tpu.dot_dimension_numbers<[1], [0], [0], [1], [0, 0, 1, 1], [], []>} : vector<256x4xf32>, vector<4x16xf32>, vector<256x16xf32> -> vector<256x16xf32>
    %59 = arith.addf %52, %58 : vector<256x16xf32>
    %c0_58 = arith.constant 0 : index
    %c4_59 = arith.constant 4 : index
    %c4_60 = arith.constant 4 : index
    %c0_61 = arith.constant 0 : index
    %60 = vector.load %arg1[%c0_58, %c4_59, %c4_60, %c0_61] : memref<1x20x20x4xf32, #tpu.memory_space<vmem>>, vector<1x16x16x4xf32>
    %61 = vector.shape_cast %60 : vector<1x16x16x4xf32> to vector<16x16x4xf32>
    %62 = vector.shape_cast %61 : vector<16x16x4xf32> to vector<256x4xf32>
    %c8 = arith.constant 8 : index
    %c0_62 = arith.constant 0 : index
    %c0_63 = arith.constant 0 : index
    %63 = vector.load %arg2[%c8, %c0_62, %c0_63] : memref<9x4x16xf32, #tpu.memory_space<vmem>>, vector<1x4x16xf32>
    %64 = vector.shape_cast %63 : vector<1x4x16xf32> to vector<4x16xf32>
    %cst_64 = arith.constant dense<0.000000e+00> : vector<256x16xf32>
    %65 = tpu.matmul %62, %64, %cst_64 {dimension_numbers = #tpu.dot_dimension_numbers<[1], [0], [0], [1], [0, 0, 1, 1], [], []>} : vector<256x4xf32>, vector<4x16xf32>, vector<256x16xf32> -> vector<256x16xf32>
    %66 = arith.addf %59, %65 : vector<256x16xf32>
    %67 = vector.extract_strided_slice %66 {offsets = [0, 0], sizes = [256, 8], strides = [1, 1]} : vector<256x16xf32> to vector<256x8xf32>
    %68 = arith.negf %67 : vector<256x8xf32>
    %69 = math.exp %68 : vector<256x8xf32>
    %cst_65 = arith.constant 1.000000e+00 : f32
    %70 = vector.broadcast %cst_65 : f32 to vector<256x8xf32>
    %71 = arith.addf %70, %69 : vector<256x8xf32>
    %72 = arith.divf %70, %71 : vector<256x8xf32>
    %73 = vector.extract_strided_slice %66 {offsets = [0, 8], sizes = [256, 8], strides = [1, 1]} : vector<256x16xf32> to vector<256x8xf32>
    %74 = math.tanh %73 : vector<256x8xf32>
    %75 = arith.mulf %72, %74 : vector<256x8xf32>
    %cst_66 = arith.constant 0.000000e+00 : f32
    %76 = vector.broadcast %cst_66 : f32 to vector<256x8xf32>
    %77 = arith.cmpf oge, %75, %76 : vector<256x8xf32>
    %cst_67 = arith.constant 2.000000e-01 : f32
    %78 = vector.broadcast %cst_67 : f32 to vector<256x8xf32>
    %79 = arith.mulf %78, %75 : vector<256x8xf32>
    %80 = arith.select %77, %75, %79 : vector<256x8xi1>, vector<256x8xf32>
    %c0_68 = arith.constant 0 : index
    %c0_69 = arith.constant 0 : index
    %c0_70 = arith.constant 0 : index
    %81 = vector.load %arg4[%c0_68, %c0_69, %c0_70] : memref<1x256x8xf32, #tpu.memory_space<vmem>>, vector<1x256x8xf32>
    %82 = vector.shape_cast %81 : vector<1x256x8xf32> to vector<256x8xf32>
    %83 = vector.shape_cast %80 : vector<256x8xf32> to vector<1x256x8xf32>
    tpu.vector_store %arg4[%c0_68, %c0_69, %c0_70], %83 {strides = array<i32>} : memref<1x256x8xf32, #tpu.memory_space<vmem>>, vector<1x256x8xf32>,
    return
  }
  func.func @transform_0(%arg0: i32) -> (i32, i32, i32, i32) {
    %c0_i32 = arith.constant 0 : i32
    %c0_i32_0 = arith.constant 0 : i32
    %c0_i32_1 = arith.constant 0 : i32
    %c0_i32_2 = arith.constant 0 : i32
    return %arg0, %c0_i32, %c0_i32_0, %c0_i32_1 : i32, i32, i32, i32
  }
  func.func @transform_1(%arg0: i32) -> (i32, i32, i32) {
    %c0_i32 = arith.constant 0 : i32
    %c0_i32_0 = arith.constant 0 : i32
    %c0_i32_1 = arith.constant 0 : i32
    %c0_i32_2 = arith.constant 0 : i32
    return %c0_i32, %c0_i32_0, %c0_i32_1 : i32, i32, i32
  }
  func.func @transform_2(%arg0: i32) -> (i32, i32) {
    %c0_i32 = arith.constant 0 : i32
    %c0_i32_0 = arith.constant 0 : i32
    %c0_i32_1 = arith.constant 0 : i32
    return %c0_i32, %c0_i32_0 : i32, i32
  }
  func.func @transform_3(%arg0: i32) -> (i32, i32, i32) {
    %c0_i32 = arith.constant 0 : i32
    %c0_i32_0 = arith.constant 0 : i32
    %c0_i32_1 = arith.constant 0 : i32
    return %arg0, %c0_i32, %c0_i32_0 : i32, i32, i32
  }
}

</mosaic_0001>

<bundles_post_ra>
// kernel: tpu_custom_call.1
= control target key start
LH: loop header
LB: loop body
LE: loop exit
PB: predicated region body
PF: predicated region fallthrough
CT: control target
= control target key end

     0   :  { %s5781_s12 = smov 0   ;;  %s7404_s0 = inlined_call_operand.vmem [shape: f32[2,20,20,4], index: 0, kind: input, shape index: {}]   ;;  %s7405_s1 = inlined_call_operand.vmem [shape: f32[9,4,16], index: 1, kind: input, shape index: {}]   ;;  %s7406_s2 = inlined_call_operand.vmem [shape: f32[1,16], index: 2, kind: input, shape index: {}]   ;;  %s7407_s3 = inlined_call_operand.vmem [shape: f32[2,256,8], index: 3, kind: output, shape index: {}]  }
   0x1 LB: > { %s4260_s13 = sadd.s32 4294967295, %s5758_s12   ;;  %p4264_p0 = scmp.ge.s32.totalorder %s5758_s12, 1  ;;  %s5758_s12 = sphi %s5781_s12, %s13_s12  }
   0x2   : > { %p137_p1 = scmp.lt.s32.totalorder %s5758_s12, 3 }
   0x4   : > { %p138_p2 = pnand %p4264_p0, %p137_p1 }
   0x6   : > { %141 = sbr.rel (%p138_p2) target bundleno = 646 (0x286), region = 32 }
   0xb   : > { %v211_v0 = vld [vmem:[%s7405_s1] sm:$0xf]  ;;  %vm309_vm0 = vcmask 1043456   ;;  %p161_p3 = scmp.lt.s32.totalorder %s4260_s13, 1  ;;  %v4302_v1 = vld [vmem:[%s7405_s1 + $0x4] sm:$0xf] }
   0xc   : > { %5548 = vmatprep.subr.msk.mxu1 %vm309_vm0, %v211_v0  ;;  %5098 = vmatprep.subr.msk.mxu0 %vm309_vm0, %v211_v0  ;;  %v4336_v2 = vld [vmem:[%s7405_s1 + $0x8] sm:$0xf]  ;;  %vm212_vm1 = vcmask 31744   ;;  %v5833_v9 = vld [vmem:[%s7405_s1 + $0xc] sm:$0xf]  ;;  %s5760_s11 = smov 120  }
   0xd   : > { %5549 = vmatpush3.msk.msra.mxu1 %vm309_vm0, %v211_v0  ;;  %5099 = vmatpush3.msk.msra.mxu0 %vm309_vm0, %v211_v0  ;;  %s7561_s13 = smov (!%p161_p3, %s4260_s13), 1  ;;  %v5838_v10 = vld [vmem:[%s7405_s1 + $0x10] sm:$0xf]  ;;  %v5989_v43 = vld [vmem:[%s7405_s1 + $0x14] sm:$0xf]  ;;  %vm4172_vm2 = vcmask 64512  }
   0xe   : > { %5148 = vmatprep.subr.msk.mxu1 %vm309_vm0, %v4302_v1  ;;  %5198 = vmatprep.subr.msk.mxu0 %vm309_vm0, %v4336_v2  ;;  %s5550_s20 = smul.u32 480, %s7561_s13  ;;  %v5994_v44 = vld [vmem:[%s7405_s1 + $0x18] sm:$0xf]  ;;  %s4800_s14 = sshll.u32 %s7561_s13, 8 }
   0xf   : > { %s7318_s17 = scalar_lea.vmem %s7407_s3, %s4800_s14 }
  0x10   : > { %s5810_s23 = scalar_lea.vmem %s7404_s0, %s5550_s20 }
  0x11   : > { %v179_v3 = vld [vmem:[%s5810_s23] sm:$0xff]  ;;  %v180_v5 = vld [vmem:[%s5810_s23 + $0x8] sm:$0xff]  ;;  %v181_v7 = vld [vmem:[%s5810_s23 + $0x18] sm:$0xff] }
  0x12   : > { %v5814_v4 = vld [vmem:[%s5810_s23 + $0xc0] sm:$0xff]  ;;  %5100 = vmatprep.mubr.msk.f32.mxu0 %vm212_vm1, %v179_v3  ;;  %v5821_v6 = vld [vmem:[%s5810_s23 + $0xc8] sm:$0xff]  ;;  %v5825_v8 = vld [vmem:[%s5810_s23 + $0xd8] sm:$0xff] }
  0x13   : > { %5124 = vmatprep.mubr.msk.f32.mxu1 %vm212_vm1, %v5814_v4  ;;  %5101 = vmatmul.mubr.msk.f32.vlgmr.msra.gmra.mxu0 %vm212_vm1, %v180_v5  ;;  %v182_v11 = vld [vmem:[%s5810_s23 + $0x20] sm:$0xff]  ;;  %v5850_v13 = vld [vmem:[%s5810_s23 + $0x30] sm:$0xff]  ;;  %v5867_v15 = vld [vmem:[%s5810_s23 + $0x38] sm:$0xff] }
  0x14   : > { %5125 = vmatmul.mubr.msk.f32.vlgmr.msra.gmra.mxu1 %vm212_vm1, %v5821_v6  ;;  %5199 = vmatpush3.msk.msra.mxu0 %vm309_vm0, %v4336_v2  ;;  %v5844_v12 = vld [vmem:[%s5810_s23 + $0xe0] sm:$0xff]  ;;  %v5853_v14 = vld [vmem:[%s5810_s23 + $0xf0] sm:$0xff]  ;;  %v5870_v16 = vld [vmem:[%s5810_s23 + $0xf8] sm:$0xff] }
  0x15   : > { %5149 = vmatpush3.msk.msra.mxu1 %vm309_vm0, %v4302_v1  ;;  %5103 = vmatprep.mubr.msk.f32.mxu0 %vm212_vm1, %v181_v7  ;;  %v5873_v17 = vld [vmem:[%s5810_s23 + $0x48] sm:$0xff]  ;;  %v5887_v19 = vld [vmem:[%s5810_s23 + $0x50] sm:$0xff]  ;;  %v5893_v21 = vld [vmem:[%s5810_s23 + $0x60] sm:$0xff] }
  0x16   : > { %5127 = vmatprep.mubr.msk.f32.mxu1 %vm212_vm1, %v5825_v8  ;;  %5248 = vmatprep.subr.msk.mxu1 %vm309_vm0, %v5833_v9  ;;  %v5876_v18 = vld [vmem:[%s5810_s23 + $0x108] sm:$0xff]  ;;  %v5890_v20 = vld [vmem:[%s5810_s23 + $0x110] sm:$0xff]  ;;  %v5896_v22 = vld [vmem:[%s5810_s23 + $0x120] sm:$0xff] }
  0x17   : > { %5298 = vmatprep.subr.msk.mxu0 %vm309_vm0, %v5838_v10  ;;  %5104 = vmatmul.mubr.msk.f32.gmra.mxu0 %vm212_vm1, %v182_v11  ;;  %v5907_v23 = vld [vmem:[%s5810_s23 + $0x68] sm:$0xff]  ;;  %v5913_v25 = vld [vmem:[%s5810_s23 + $0x78] sm:$0xff]  ;;  %v5927_v27 = vld [vmem:[%s5810_s23 + $0x80] sm:$0xff] }
  0x18   : > { %5128 = vmatmul.mubr.msk.f32.gmra.mxu1 %vm212_vm1, %v5844_v12  ;;  %5106 = vmatprep.mubr.msk.f32.mxu0 %vm212_vm1, %v5850_v13  ;;  %v5910_v24 = vld [vmem:[%s5810_s23 + $0x128] sm:$0xff]  ;;  %v5916_v26 = vld [vmem:[%s5810_s23 + $0x138] sm:$0xff]  ;;  %v5930_v28 = vld [vmem:[%s5810_s23 + $0x140] sm:$0xff] }
  0x19   : > { %5130 = vmatprep.mubr.msk.f32.mxu1 %vm212_vm1, %v5853_v14  ;;  %v5933_v29 = vld [vmem:[%s5810_s23 + $0x90] sm:$0xff]  ;;  %v5947_v31 = vld [vmem:[%s5810_s23 + $0x98] sm:$0xff]  ;;  %v5953_v33 = vld [vmem:[%s5810_s23 + $0xa8] sm:$0xff] }
  0x1a   : > { %v5936_v30 = vld [vmem:[%s5810_s23 + $0x150] sm:$0xff]  ;;  %v5950_v32 = vld [vmem:[%s5810_s23 + $0x158] sm:$0xff]  ;;  %v5956_v34 = vld [vmem:[%s5810_s23 + $0x168] sm:$0xff] }
  0x1b   : > { %5107 = vmatmul.mubr.msk.f32.gmra.mxu0 %vm212_vm1, %v5867_v15  ;;  %v5967_v35 = vld [vmem:[%s5810_s23 + $0xb0] sm:$0xff]  ;;  %v570_v37 = vld [vmem:[%s5810_s23 + $0x2] sm:$0xff]  ;;  %v572_v41 = vld [vmem:[%s5810_s23 + $0x1a] sm:$0xff] }
  0x1c   : > { %5131 = vmatmul.mubr.msk.f32.gmra.mxu1 %vm212_vm1, %v5870_v16  ;;  %5109 = vmatprep.mubr.msk.f32.mxu0 %vm212_vm1, %v5873_v17  ;;  %v5970_v36 = vld [vmem:[%s5810_s23 + $0x170] sm:$0xff]  ;;  %v960_v38 = vld [vmem:[%s5810_s23 + $0x4] sm:$0xff]  ;;  %v962_v42 = vld [vmem:[%s5810_s23 + $0x1c] sm:$0xff] }
  0x1d   : > { %5133 = vmatprep.mubr.msk.f32.mxu1 %vm212_vm1, %v5876_v18  ;;  %v571_v39 = vld [vmem:[%s5810_s23 + $0xa] sm:$0xff]  ;;  %v573_v45 = vld [vmem:[%s5810_s23 + $0x22] sm:$0xff]  ;;  %v6005_v47 = vld [vmem:[%s5810_s23 + $0x32] sm:$0xff] }
  0x1e   : > { %v961_v40 = vld [vmem:[%s5810_s23 + $0xc] sm:$0xff]  ;;  %v963_v46 = vld [vmem:[%s5810_s23 + $0x24] sm:$0xff]  ;;  %v6008_v48 = vld [vmem:[%s5810_s23 + $0x34] sm:$0xff] }
  0x1f   : > { %5110 = vmatmul.mubr.msk.f32.gmra.mxu0 %vm212_vm1, %v5887_v19  ;;  %v6021_v49 = vld [vmem:[%s5810_s23 + $0x3a] sm:$0xff]  ;;  %v6027_v51 = vld [vmem:[%s5810_s23 + $0x4a] sm:$0xff]  ;;  %v6041_v53 = vld [vmem:[%s5810_s23 + $0x52] sm:$0xff] }
  0x20   : > { %5134 = vmatmul.mubr.msk.f32.gmra.mxu1 %vm212_vm1, %v5890_v20  ;;  %5112 = vmatprep.mubr.msk.f32.mxu0 %vm212_vm1, %v5893_v21  ;;  %v6024_v50 = vld [vmem:[%s5810_s23 + $0x3c] sm:$0xff]  ;;  %v6030_v52 = vld [vmem:[%s5810_s23 + $0x4c] sm:$0xff]  ;;  %v6044_v54 = vld [vmem:[%s5810_s23 + $0x54] sm:$0xff] }
  0x21   : > { %5136 = vmatprep.mubr.msk.f32.mxu1 %vm212_vm1, %v5896_v22  ;;  %7462 = vst [vmem:[#allocation2_spill] sm:$0xff] %v6044_v54  ;;  %v6047_v55 = vld [vmem:[%s5810_s23 + $0x62] sm:$0xff]  ;;  %v6061_v57 = vld [vmem:[%s5810_s23 + $0x6a] sm:$0xff]  ;;  %v6067_v59 = vld [vmem:[%s5810_s23 + $0x7a] sm:$0xff] }
  0x22   : > { %v6050_v56 = vld [vmem:[%s5810_s23 + $0x64] sm:$0xff]  ;;  %v6064_v58 = vld [vmem:[%s5810_s23 + $0x6c] sm:$0xff]  ;;  %v6070_v60 = vld [vmem:[%s5810_s23 + $0x7c] sm:$0xff] }
  0x23   : > { %5113 = vmatmul.mubr.msk.f32.gmra.mxu0 %vm212_vm1, %v5907_v23  ;;  %7463 = vst [vmem:[#allocation3_spill] sm:$0xff] %v6050_v56  ;;  %7464 = vst [vmem:[#allocation4_spill] sm:$0xff] %v6064_v58  ;;  %v6081_v61 = vld [vmem:[%s5810_s23 + $0x82] sm:$0xff]  ;;  %v6087_v63 = vld [vmem:[%s5810_s23 + $0x92] sm:$0xff] }
  0x24   : > { %5137 = vmatmul.mubr.msk.f32.gmra.mxu1 %vm212_vm1, %v5910_v24  ;;  %5115 = vmatprep.mubr.msk.f32.mxu0 %vm212_vm1, %v5913_v25  ;;  %7465 = vst [vmem:[#allocation5_spill] sm:$0xff] %v6070_v60  ;;  %v6084_v62 = vld [vmem:[%s5810_s23 + $0x84] sm:$0xff]  ;;  %v6090_v0 = vld [vmem:[%s5810_s23 + $0x94] sm:$0xff]  ;;  %v6104_v2 = vld [vmem:[%s5810_s23 + $0x9c] sm:$0xff] }
  0x25   : > { %5139 = vmatprep.mubr.msk.f32.mxu1 %vm212_vm1, %v5916_v26  ;;  %7466 = vst [vmem:[#allocation6_spill] sm:$0xff] %v6084_v62  ;;  %7467 = vst [vmem:[#allocation7_spill] sm:$0xff] %v6090_v0  ;;  %v6101_v1 = vld [vmem:[%s5810_s23 + $0x9a] sm:$0xff]  ;;  %v6107_v3 = vld [vmem:[%s5810_s23 + $0xaa] sm:$0xff] }
  0x26   : > { %7468 = vst [vmem:[#allocation8_spill] sm:$0xff] %v6104_v2  ;;  %v6110_v5 = vld [vmem:[%s5810_s23 + $0xac] sm:$0xff]  ;;  %v6130_v11 = vld [vmem:[%s5810_s23 + $0xc4] sm:$0xff] }
  0x27   : > { %5116 = vmatmul.mubr.msk.f32.gmra.mxu0 %vm212_vm1, %v5927_v27  ;;  %7469 = vst [vmem:[#allocation9_spill] sm:$0xff] %v6110_v5  ;;  %v6121_v7 = vld [vmem:[%s5810_s23 + $0xb2] sm:$0xff]  ;;  %7471 = vst [vmem:[#allocation11_spill] sm:$0xff] %v6130_v11 }
  0x28   : > { %5140 = vmatmul.mubr.msk.f32.gmra.mxu1 %vm212_vm1, %v5930_v28  ;;  %5118 = vmatprep.mubr.msk.f32.mxu0 %vm212_vm1, %v5933_v29 }
  0x29   : > { %5142 = vmatprep.mubr.msk.f32.mxu1 %vm212_vm1, %v5936_v30 }
  0x2b   : > { %5119 = vmatmul.mubr.msk.f32.gmra.mxu0 %vm212_vm1, %v5947_v31 }
  0x2c   : > { %5143 = vmatmul.mubr.msk.f32.gmra.mxu1 %vm212_vm1, %v5950_v32  ;;  %5121 = vmatprep.mubr.msk.f32.mxu0 %vm212_vm1, %v5953_v33 }
  0x2d   : > { %5145 = vmatprep.mubr.msk.f32.mxu1 %vm212_vm1, %v5956_v34 }
  0x2f   : > { %5122 = vmatmul.mubr.msk.f32.gmra.mxu0 %vm212_vm1, %v5967_v35 }
  0x30   : > { %5146 = vmatmul.mubr.msk.f32.gmra.mxu1 %vm212_vm1, %v5970_v36  ;;  %5200 = vmatprep.mubr.msk.f32.mxu0 %vm212_vm1, %v960_v38  ;;  %v6144_v38 = vld [vmem:[%s5810_s23 + $0xcc] sm:$0xff] }
  0x31   : > { %5150 = vmatprep.mubr.msk.f32.mxu1 %vm212_vm1, %v570_v37  ;;  %v6141_v37 = vld [vmem:[%s5810_s23 + $0xca] sm:$0xff]  ;;  %7472 = vst [vmem:[#allocation12_spill] sm:$0xff] %v6144_v38 }
  0x33   : > { %5201 = vmatmul.mubr.msk.f32.vlgmr.msra.gmra.mxu0 %vm212_vm1, %v961_v40  ;;  %v6150_v40 = vld [vmem:[%s5810_s23 + $0xdc] sm:$0xff] }
  0x34   : > { %5151 = vmatmul.mubr.msk.f32.vlgmr.msra.gmra.mxu1 %vm212_vm1, %v571_v39  ;;  %5299 = vmatpush3.msk.msra.mxu0 %vm309_vm0, %v5838_v10  ;;  %v6127_v10 = vld [vmem:[%s5810_s23 + $0xc2] sm:$0xff]  ;;  %v6147_v39 = vld [vmem:[%s5810_s23 + $0xda] sm:$0xff]  ;;  %7473 = vst [vmem:[#allocation13_spill] sm:$0xff] %v6150_v40 }
  0x35   : > { %5249 = vmatpush3.msk.msra.mxu1 %vm309_vm0, %v5833_v9  ;;  %5153 = vmatprep.mubr.msk.f32.mxu1 %vm212_vm1, %v572_v41  ;;  %v6124_v9 = vld [vmem:[%s5810_s23 + $0xb4] sm:$0xff]  ;;  %v6161_v41 = vld [vmem:[%s5810_s23 + $0xe2] sm:$0xff] }
  0x36   : > { %5203 = vmatprep.mubr.msk.f32.mxu0 %vm212_vm1, %v962_v42  ;;  %5348 = vmatprep.subr.msk.mxu1 %vm309_vm0, %v5989_v43  ;;  %7470 = vst [vmem:[#allocation10_spill] sm:$0xff] %v6124_v9  ;;  %v6164_v42 = vld [vmem:[%s5810_s23 + $0xe4] sm:$0xff] }
  0x37   : > { %5398 = vmatprep.subr.msk.mxu0 %vm309_vm0, %v5994_v44  ;;  %5204 = vmatmul.mubr.msk.f32.gmra.mxu0 %vm212_vm1, %v963_v46  ;;  %7474 = vst [vmem:[#allocation14_spill] sm:$0xff] %v6164_v42  ;;  %v6170_v46 = vld [vmem:[%s5810_s23 + $0xf4] sm:$0xff] }
  0x38   : > { %5154 = vmatmul.mubr.msk.f32.gmra.mxu1 %vm212_vm1, %v573_v45  ;;  %5206 = vmatprep.mubr.msk.f32.mxu0 %vm212_vm1, %v6008_v48  ;;  %v6167_v45 = vld [vmem:[%s5810_s23 + $0xf2] sm:$0xff]  ;;  %7475 = vst [vmem:[#allocation15_spill] sm:$0xff] %v6170_v46 }
  0x39   : > { %5156 = vmatprep.mubr.msk.f32.mxu1 %vm212_vm1, %v6005_v47 }
  0x3b   : > { %5207 = vmatmul.mubr.msk.f32.gmra.mxu0 %vm212_vm1, %v6024_v50 }
  0x3c   : > { %5157 = vmatmul.mubr.msk.f32.gmra.mxu1 %vm212_vm1, %v6021_v49  ;;  %5209 = vmatprep.mubr.msk.f32.mxu0 %vm212_vm1, %v6030_v52 }
  0x3d   : > { %5159 = vmatprep.mubr.msk.f32.mxu1 %vm212_vm1, %v6027_v51 }
  0x3f   : > { %5210 = vmatmul.mubr.msk.f32.gmra.mxu0 %vm212_vm1, %v6044_v54  ;;  %v6270_v54 = vld [vmem:[%s5810_s23 + $0x16c] sm:$0xff] }
  0x40   : > { %5160 = vmatmul.mubr.msk.f32.gmra.mxu1 %vm212_vm1, %v6041_v53  ;;  %5212 = vmatprep.mubr.msk.f32.mxu0 %vm212_vm1, %v6050_v56  ;;  %v6267_v56 = vld [vmem:[%s5810_s23 + $0x16a] sm:$0xff]  ;;  %7487 = vst [vmem:[#allocation27_spill] sm:$0xff] %v6270_v54 }
  0x41   : > { %5162 = vmatprep.mubr.msk.f32.mxu1 %vm212_vm1, %v6047_v55 }
  0x43   : > { %5213 = vmatmul.mubr.msk.f32.gmra.mxu0 %vm212_vm1, %v6064_v58  ;;  %v6250_v58 = vld [vmem:[%s5810_s23 + $0x154] sm:$0xff] }
  0x44   : > { %5163 = vmatmul.mubr.msk.f32.gmra.mxu1 %vm212_vm1, %v6061_v57  ;;  %5215 = vmatprep.mubr.msk.f32.mxu0 %vm212_vm1, %v6070_v60  ;;  %v6247_v60 = vld [vmem:[%s5810_s23 + $0x152] sm:$0xff]  ;;  %7485 = vst [vmem:[#allocation25_spill] sm:$0xff] %v6250_v58 }
  0x45   : > { %5165 = vmatprep.mubr.msk.f32.mxu1 %vm212_vm1, %v6067_v59  ;;  %7484 = vst [vmem:[#allocation24_spill] sm:$0xff] %v6247_v60 }
  0x47   : > { %5216 = vmatmul.mubr.msk.f32.gmra.mxu0 %vm212_vm1, %v6084_v62  ;;  %v6230_v62 = vld [vmem:[%s5810_s23 + $0x13c] sm:$0xff] }
  0x48   : > { %5166 = vmatmul.mubr.msk.f32.gmra.mxu1 %vm212_vm1, %v6081_v61  ;;  %5218 = vmatprep.mubr.msk.f32.mxu0 %vm212_vm1, %v6090_v0  ;;  %v6227_v0 = vld [vmem:[%s5810_s23 + $0x13a] sm:$0xff]  ;;  %7481 = vst [vmem:[#allocation21_spill] sm:$0xff] %v6230_v62 }
  0x49   : > { %5168 = vmatprep.mubr.msk.f32.mxu1 %vm212_vm1, %v6087_v63 }
  0x4b   : > { %5219 = vmatmul.mubr.msk.f32.gmra.mxu0 %vm212_vm1, %v6104_v2  ;;  %v6210_v2 = vld [vmem:[%s5810_s23 + $0x124] sm:$0xff] }
  0x4c   : > { %5169 = vmatmul.mubr.msk.f32.gmra.mxu1 %vm212_vm1, %v6101_v1  ;;  %5221 = vmatprep.mubr.msk.f32.mxu0 %vm212_vm1, %v6110_v5  ;;  %v6207_v5 = vld [vmem:[%s5810_s23 + $0x122] sm:$0xff]  ;;  %7479 = vst [vmem:[#allocation19_spill] sm:$0xff] %v6210_v2 }
  0x4d   : > { %5171 = vmatprep.mubr.msk.f32.mxu1 %vm212_vm1, %v6107_v3 }
  0x4f   : > { %5222 = vmatmul.mubr.msk.f32.gmra.mxu0 %vm212_vm1, %v6124_v9  ;;  %v6190_v9 = vld [vmem:[%s5810_s23 + $0x10c] sm:$0xff] }
  0x50   : > { %5172 = vmatmul.mubr.msk.f32.gmra.mxu1 %vm212_vm1, %v6121_v7  ;;  %5224 = vmatprep.mubr.msk.f32.mxu0 %vm212_vm1, %v6130_v11  ;;  %v6187_v11 = vld [vmem:[%s5810_s23 + $0x10a] sm:$0xff]  ;;  %7477 = vst [vmem:[#allocation17_spill] sm:$0xff] %v6190_v9 }
  0x51   : > { %5174 = vmatprep.mubr.msk.f32.mxu1 %vm212_vm1, %v6127_v10 }
  0x53   : > { %5225 = vmatmul.mubr.msk.f32.gmra.mxu0 %vm212_vm1, %v6144_v38  ;;  %v6184_v38 = vld [vmem:[%s5810_s23 + $0xfc] sm:$0xff] }
  0x54   : > { %5175 = vmatmul.mubr.msk.f32.gmra.mxu1 %vm212_vm1, %v6141_v37  ;;  %5227 = vmatprep.mubr.msk.f32.mxu0 %vm212_vm1, %v6150_v40  ;;  %v6181_v40 = vld [vmem:[%s5810_s23 + $0xfa] sm:$0xff]  ;;  %7476 = vst [vmem:[#allocation16_spill] sm:$0xff] %v6184_v38 }
  0x55   : > { %5177 = vmatprep.mubr.msk.f32.mxu1 %vm212_vm1, %v6147_v39 }
  0x57   : > { %5228 = vmatmul.mubr.msk.f32.gmra.mxu0 %vm212_vm1, %v6164_v42  ;;  %v6204_v42 = vld [vmem:[%s5810_s23 + $0x114] sm:$0xff] }
  0x58   : > { %5178 = vmatmul.mubr.msk.f32.gmra.mxu1 %vm212_vm1, %v6161_v41  ;;  %5230 = vmatprep.mubr.msk.f32.mxu0 %vm212_vm1, %v6170_v46  ;;  %v6201_v46 = vld [vmem:[%s5810_s23 + $0x112] sm:$0xff]  ;;  %7478 = vst [vmem:[#allocation18_spill] sm:$0xff] %v6204_v42 }
  0x59   : > { %5180 = vmatprep.mubr.msk.f32.mxu1 %vm212_vm1, %v6167_v45 }
  0x5b   : > { %5231 = vmatmul.mubr.msk.f32.gmra.mxu0 %vm212_vm1, %v6184_v38  ;;  %v6224_v38 = vld [vmem:[%s5810_s23 + $0x12c] sm:$0xff] }
  0x5c   : > { %5181 = vmatmul.mubr.msk.f32.gmra.mxu1 %vm212_vm1, %v6181_v40  ;;  %5233 = vmatprep.mubr.msk.f32.mxu0 %vm212_vm1, %v6190_v9  ;;  %v6221_v9 = vld [vmem:[%s5810_s23 + $0x12a] sm:$0xff]  ;;  %7480 = vst [vmem:[#allocation20_spill] sm:$0xff] %v6224_v38 }
  0x5d   : > { %5183 = vmatprep.mubr.msk.f32.mxu1 %vm212_vm1, %v6187_v11 }
  0x5f   : > { %5234 = vmatmul.mubr.msk.f32.gmra.mxu0 %vm212_vm1, %v6204_v42  ;;  %v6244_v42 = vld [vmem:[%s5810_s23 + $0x144] sm:$0xff] }
  0x60   : > { %5184 = vmatmul.mubr.msk.f32.gmra.mxu1 %vm212_vm1, %v6201_v46  ;;  %5236 = vmatprep.mubr.msk.f32.mxu0 %vm212_vm1, %v6210_v2  ;;  %v6241_v2 = vld [vmem:[%s5810_s23 + $0x142] sm:$0xff]  ;;  %7483 = vst [vmem:[#allocation23_spill] sm:$0xff] %v6244_v42 }
  0x61   : > { %5186 = vmatprep.mubr.msk.f32.mxu1 %vm212_vm1, %v6207_v5  ;;  %7482 = vst [vmem:[#allocation22_spill] sm:$0xff] %v6241_v2 }
  0x63   : > { %5237 = vmatmul.mubr.msk.f32.gmra.mxu0 %vm212_vm1, %v6224_v38  ;;  %v6264_v38 = vld [vmem:[%s5810_s23 + $0x15c] sm:$0xff] }
  0x64   : > { %5187 = vmatmul.mubr.msk.f32.gmra.mxu1 %vm212_vm1, %v6221_v9  ;;  %5239 = vmatprep.mubr.msk.f32.mxu0 %vm212_vm1, %v6230_v62  ;;  %v6261_v62 = vld [vmem:[%s5810_s23 + $0x15a] sm:$0xff] }
  0x65   : > { %5189 = vmatprep.mubr.msk.f32.mxu1 %vm212_vm1, %v6227_v0  ;;  %7486 = vst [vmem:[#allocation26_spill] sm:$0xff] %v6261_v62 }
  0x67   : > { %5240 = vmatmul.mubr.msk.f32.gmra.mxu0 %vm212_vm1, %v6244_v42  ;;  %v6284_v42 = vld [vmem:[%s5810_s23 + $0x174] sm:$0xff] }
  0x68   : > { %5190 = vmatmul.mubr.msk.f32.gmra.mxu1 %vm212_vm1, %v6241_v2  ;;  %5242 = vmatprep.mubr.msk.f32.mxu0 %vm212_vm1, %v6250_v58  ;;  %v6281_v58 = vld [vmem:[%s5810_s23 + $0x172] sm:$0xff]  ;;  %7488 = vst [vmem:[#allocation28_spill] sm:$0xff] %v6284_v42 }
  0x69   : > { %5192 = vmatprep.mubr.msk.f32.mxu1 %vm212_vm1, %v6247_v60 }
  0x6b   : > { %5243 = vmatmul.mubr.msk.f32.gmra.mxu0 %vm212_vm1, %v6264_v38 }
  0x6c   : > { %5193 = vmatmul.mubr.msk.f32.gmra.mxu1 %vm212_vm1, %v6261_v62  ;;  %5245 = vmatprep.mubr.msk.f32.mxu0 %vm212_vm1, %v6270_v54  ;;  %v6301_v54 = vld [vmem:[%s7405_s1 + $0x1c] sm:$0xf] }
  0x6d   : > { %5195 = vmatprep.mubr.msk.f32.mxu1 %vm212_vm1, %v6267_v56 }
  0x6f   : > { %5246 = vmatmul.mubr.msk.f32.gmra.mxu0 %vm212_vm1, %v6284_v42  ;;  %v6306_v42 = vld [vmem:[%s7405_s1 + $0x20] sm:$0xf] }
  0x70   : > { %5196 = vmatmul.mubr.msk.f32.gmra.mxu1 %vm212_vm1, %v6281_v58  ;;  %5300 = vmatprep.mubr.msk.f32.mxu0 %vm212_vm1, %v6005_v47  ;;  %v6451_v47 = vld [vmem:[%s5810_s23 + $0x1a0] sm:$0xff] }
  0x71   : > { %5250 = vmatprep.mubr.msk.f32.mxu1 %vm212_vm1, %v5850_v13  ;;  %v6417_v13 = vld [vmem:[%s5810_s23 + $0x180] sm:$0xff] }
  0x73   : > { %5301 = vmatmul.mubr.msk.f32.vlgmr.msra.gmra.mxu0 %vm212_vm1, %v6021_v49  ;;  %v6454_v49 = vld [vmem:[%s5810_s23 + $0x1a2] sm:$0xff] }
  0x74   : > { %5251 = vmatmul.mubr.msk.f32.vlgmr.msra.gmra.mxu1 %vm212_vm1, %v5867_v15  ;;  %5399 = vmatpush3.msk.msra.mxu0 %vm309_vm0, %v5994_v44  ;;  %v6420_v15 = vld [vmem:[%s5810_s23 + $0x182] sm:$0xff]  ;;  %v6440_v44 = vld [vmem:[%s5810_s23 + $0x19a] sm:$0xff]  ;;  %7492 = vst [vmem:[#allocation32_spill] sm:$0xff] %v6454_v49 }
  0x75   : > { %5349 = vmatpush3.msk.msra.mxu1 %vm309_vm0, %v5989_v43  ;;  %5253 = vmatprep.mubr.msk.f32.mxu1 %vm212_vm1, %v5873_v17  ;;  %7489 = vst [vmem:[#allocation29_spill] sm:$0xff] %v6420_v15  ;;  %v6431_v17 = vld [vmem:[%s5810_s23 + $0x188] sm:$0xff]  ;;  %v6437_v43 = vld [vmem:[%s5810_s23 + $0x198] sm:$0xff]  ;;  %7491 = vst [vmem:[#allocation31_spill] sm:$0xff] %v6440_v44 }
  0x76   : > { %5303 = vmatprep.mubr.msk.f32.mxu0 %vm212_vm1, %v6027_v51  ;;  %5448 = vmatprep.subr.msk.mxu1 %vm309_vm0, %v6301_v54  ;;  %v7507_v51 = vld [vmem:[#allocation16_spill] sm:$0xff] }
  0x77   : > { %5498 = vmatprep.subr.msk.mxu0 %vm309_vm0, %v6306_v42  ;;  %5304 = vmatmul.mubr.msk.f32.gmra.mxu0 %vm212_vm1, %v6041_v53 }
  0x78   : > { %5254 = vmatmul.mubr.msk.f32.gmra.mxu1 %vm212_vm1, %v5887_v19  ;;  %5306 = vmatprep.mubr.msk.f32.mxu0 %vm212_vm1, %v6047_v55  ;;  %v6434_v19 = vld [vmem:[%s5810_s23 + $0x18a] sm:$0xff] }
  0x79   : > { %5256 = vmatprep.mubr.msk.f32.mxu1 %vm212_vm1, %v5893_v21  ;;  %7490 = vst [vmem:[#allocation30_spill] sm:$0xff] %v6434_v19 }
  0x7b   : > { %5307 = vmatmul.mubr.msk.f32.gmra.mxu0 %vm212_vm1, %v6061_v57 }
  0x7c   : > { %5257 = vmatmul.mubr.msk.f32.gmra.mxu1 %vm212_vm1, %v5907_v23  ;;  %5309 = vmatprep.mubr.msk.f32.mxu0 %vm212_vm1, %v6067_v59 }
  0x7d   : > { %5259 = vmatprep.mubr.msk.f32.mxu1 %vm212_vm1, %v5913_v25 }
  0x7f   : > { %5310 = vmatmul.mubr.msk.f32.gmra.mxu0 %vm212_vm1, %v6081_v61 }
  0x80   : > { %5260 = vmatmul.mubr.msk.f32.gmra.mxu1 %vm212_vm1, %v5927_v27  ;;  %5312 = vmatprep.mubr.msk.f32.mxu0 %vm212_vm1, %v6087_v63 }
  0x81   : > { %5262 = vmatprep.mubr.msk.f32.mxu1 %vm212_vm1, %v5933_v29 }
  0x83   : > { %5313 = vmatmul.mubr.msk.f32.gmra.mxu0 %vm212_vm1, %v6101_v1 }
  0x84   : > { %5263 = vmatmul.mubr.msk.f32.gmra.mxu1 %vm212_vm1, %v5947_v31  ;;  %5315 = vmatprep.mubr.msk.f32.mxu0 %vm212_vm1, %v6107_v3 }
  0x85   : > { %5265 = vmatprep.mubr.msk.f32.mxu1 %vm212_vm1, %v5953_v33 }
  0x87   : > { %5316 = vmatmul.mubr.msk.f32.gmra.mxu0 %vm212_vm1, %v6121_v7 }
  0x88   : > { %5266 = vmatmul.mubr.msk.f32.gmra.mxu1 %vm212_vm1, %v5967_v35  ;;  %5318 = vmatprep.mubr.msk.f32.mxu0 %vm212_vm1, %v6127_v10 }
  0x89   : > { %5268 = vmatprep.mubr.msk.f32.mxu1 %vm212_vm1, %v5814_v4 }
  0x8b   : > { %5319 = vmatmul.mubr.msk.f32.gmra.mxu0 %vm212_vm1, %v6141_v37 }
  0x8c   : > { %5269 = vmatmul.mubr.msk.f32.gmra.mxu1 %vm212_vm1, %v5821_v6  ;;  %5321 = vmatprep.mubr.msk.f32.mxu0 %vm212_vm1, %v6147_v39 }
  0x8d   : > { %5271 = vmatprep.mubr.msk.f32.mxu1 %vm212_vm1, %v5825_v8 }
  0x8f   : > { %5322 = vmatmul.mubr.msk.f32.gmra.mxu0 %vm212_vm1, %v6161_v41 }
  0x90   : > { %5272 = vmatmul.mubr.msk.f32.gmra.mxu1 %vm212_vm1, %v5844_v12  ;;  %5324 = vmatprep.mubr.msk.f32.mxu0 %vm212_vm1, %v6167_v45 }
  0x91   : > { %5274 = vmatprep.mubr.msk.f32.mxu1 %vm212_vm1, %v5853_v14 }
  0x93   : > { %5325 = vmatmul.mubr.msk.f32.gmra.mxu0 %vm212_vm1, %v6181_v40 }
  0x94   : > { %5275 = vmatmul.mubr.msk.f32.gmra.mxu1 %vm212_vm1, %v5870_v16  ;;  %5327 = vmatprep.mubr.msk.f32.mxu0 %vm212_vm1, %v6187_v11 }
  0x95   : > { %5277 = vmatprep.mubr.msk.f32.mxu1 %vm212_vm1, %v5876_v18 }
  0x97   : > { %5328 = vmatmul.mubr.msk.f32.gmra.mxu0 %vm212_vm1, %v6201_v46 }
  0x98   : > { %5278 = vmatmul.mubr.msk.f32.gmra.mxu1 %vm212_vm1, %v5890_v20  ;;  %5330 = vmatprep.mubr.msk.f32.mxu0 %vm212_vm1, %v6207_v5 }
  0x99   : > { %5280 = vmatprep.mubr.msk.f32.mxu1 %vm212_vm1, %v5896_v22 }
  0x9b   : > { %5331 = vmatmul.mubr.msk.f32.gmra.mxu0 %vm212_vm1, %v6221_v9 }
  0x9c   : > { %5281 = vmatmul.mubr.msk.f32.gmra.mxu1 %vm212_vm1, %v5910_v24  ;;  %5333 = vmatprep.mubr.msk.f32.mxu0 %vm212_vm1, %v6227_v0 }
  0x9d   : > { %5283 = vmatprep.mubr.msk.f32.mxu1 %vm212_vm1, %v5916_v26 }
  0x9f   : > { %5334 = vmatmul.mubr.msk.f32.gmra.mxu0 %vm212_vm1, %v6241_v2  ;;  %v4598_v2 = vld [vmem:[%s5810_s23 + $0x1c8] sm:$0xff] }
  0xa0   : > { %5284 = vmatmul.mubr.msk.f32.gmra.mxu1 %vm212_vm1, %v5930_v28  ;;  %5336 = vmatprep.mubr.msk.f32.mxu0 %vm212_vm1, %v6247_v60 }
  0xa1   : > { %5286 = vmatprep.mubr.msk.f32.mxu1 %vm212_vm1, %v5936_v30 }
  0xa3   : > { %5337 = vmatmul.mubr.msk.f32.gmra.mxu0 %vm212_vm1, %v6261_v62  ;;  %v7517_v62 = vld [vmem:[#allocation23_spill] sm:$0xff] }
  0xa4   : > { %5287 = vmatmul.mubr.msk.f32.gmra.mxu1 %vm212_vm1, %v5950_v32  ;;  %5339 = vmatprep.mubr.msk.f32.mxu0 %vm212_vm1, %v6267_v56 }
  0xa5   : > { %5289 = vmatprep.mubr.msk.f32.mxu1 %vm212_vm1, %v5956_v34 }
  0xa7   : > { %5340 = vmatmul.mubr.msk.f32.gmra.mxu0 %vm212_vm1, %v6281_v58 }
  0xa8   : > { %5290 = vmatmul.mubr.msk.f32.gmra.mxu1 %vm212_vm1, %v5970_v36  ;;  %5342 = vmatprep.mubr.msk.f32.mxu0 %vm212_vm1, %v6420_v15 }
  0xa9   : > { %5292 = vmatprep.mubr.msk.f32.mxu1 %vm212_vm1, %v6417_v13 }
  0xab   : > { %5343 = vmatmul.mubr.msk.f32.gmra.mxu0 %vm212_vm1, %v6434_v19 }
  0xac   : > { %5293 = vmatmul.mubr.msk.f32.gmra.mxu1 %vm212_vm1, %v6431_v17  ;;  %5345 = vmatprep.mubr.msk.f32.mxu0 %vm212_vm1, %v6440_v44  ;;  %v6583_v44 = vld [vmem:[%s7406_s2] ss:$0 sm:$0xff] }
  0xad   : > { %5295 = vmatprep.mubr.msk.f32.mxu1 %vm212_vm1, %v6437_v43 }
  0xaf   : > { %5346 = vmatmul.mubr.msk.f32.gmra.mxu0 %vm212_vm1, %v6454_v49 }
  0xb0   : > { %5296 = vmatmul.mubr.msk.f32.gmra.mxu1 %vm212_vm1, %v6451_v47  ;;  %5400 = vmatprep.mubr.msk.f32.mxu0 %vm212_vm1, %v5893_v21  ;;  %v7494_v21 = vld [vmem:[#allocation3_spill] sm:$0xff] }
  0xb1   : > { %5350 = vmatprep.mubr.msk.f32.mxu1 %vm212_vm1, %v6008_v48  ;;  %v7493_v48 = vld [vmem:[#allocation2_spill] sm:$0xff] }
  0xb3   : > { %5401 = vmatmul.mubr.msk.f32.vlgmr.msra.gmra.mxu0 %vm212_vm1, %v5907_v23  ;;  %v7495_v23 = vld [vmem:[#allocation4_spill] sm:$0xff] }
  0xb4   : > { %5351 = vmatmul.mubr.msk.f32.vlgmr.msra.gmra.mxu1 %vm212_vm1, %v6024_v50  ;;  %5499 = vmatpush3.msk.msra.mxu0 %vm309_vm0, %v6306_v42  ;;  %v7496_v50 = vld [vmem:[#allocation5_spill] sm:$0xff] }
  0xb5   : > { %5449 = vmatpush3.msk.msra.mxu1 %vm309_vm0, %v6301_v54  ;;  %5353 = vmatprep.mubr.msk.f32.mxu1 %vm212_vm1, %v6030_v52  ;;  %v7510_v54 = vld [vmem:[#allocation18_spill] sm:$0xff] }
  0xb6   : > { %5403 = vmatprep.mubr.msk.f32.mxu0 %vm212_vm1, %v5913_v25  ;;  %v7497_v25 = vld [vmem:[#allocation6_spill] sm:$0xff] }
  0xb7   : > { %5404 = vmatmul.mubr.msk.f32.gmra.mxu0 %vm212_vm1, %v5927_v27  ;;  %v7498_v27 = vld [vmem:[#allocation7_spill] sm:$0xff] }
  0xb8   : > { %5354 = vmatmul.mubr.msk.f32.gmra.mxu1 %vm212_vm1, %v7493_v48  ;;  %5406 = vmatprep.mubr.msk.f32.mxu0 %vm212_vm1, %v5933_v29  ;;  %v7499_v29 = vld [vmem:[#allocation8_spill] sm:$0xff] }
  0xb9   : > { %5356 = vmatprep.mubr.msk.f32.mxu1 %vm212_vm1, %v7494_v21  ;;  %v7514_v48 = vld [vmem:[#allocation20_spill] sm:$0xff] }
  0xbb   : > { %5407 = vmatmul.mubr.msk.f32.gmra.mxu0 %vm212_vm1, %v5947_v31  ;;  %v7500_v31 = vld [vmem:[#allocation9_spill] sm:$0xff] }
  0xbc   : > { %5357 = vmatmul.mubr.msk.f32.gmra.mxu1 %vm212_vm1, %v7495_v23  ;;  %5409 = vmatprep.mubr.msk.f32.mxu0 %vm212_vm1, %v5953_v33  ;;  %v7501_v33 = vld [vmem:[#allocation10_spill] sm:$0xff] }
  0xbd   : > { %5359 = vmatprep.mubr.msk.f32.mxu1 %vm212_vm1, %v7496_v50 }
  0xbf   : > { %5410 = vmatmul.mubr.msk.f32.gmra.mxu0 %vm212_vm1, %v5967_v35  ;;  %v7502_v35 = vld [vmem:[#allocation11_spill] sm:$0xff] }
  0xc0   : > { %5360 = vmatmul.mubr.msk.f32.gmra.mxu1 %vm212_vm1, %v7497_v25  ;;  %5412 = vmatprep.mubr.msk.f32.mxu0 %vm212_vm1, %v5814_v4  ;;  %v7503_v4 = vld [vmem:[#allocation12_spill] sm:$0xff] }
  0xc1   : > { %5362 = vmatprep.mubr.msk.f32.mxu1 %vm212_vm1, %v7498_v27 }
  0xc3   : > { %5413 = vmatmul.mubr.msk.f32.gmra.mxu0 %vm212_vm1, %v5821_v6  ;;  %v7504_v6 = vld [vmem:[#allocation13_spill] sm:$0xff] }
  0xc4   : > { %5363 = vmatmul.mubr.msk.f32.gmra.mxu1 %vm212_vm1, %v7499_v29  ;;  %5415 = vmatprep.mubr.msk.f32.mxu0 %vm212_vm1, %v5825_v8  ;;  %v7505_v8 = vld [vmem:[#allocation14_spill] sm:$0xff] }
  0xc5   : > { %5365 = vmatprep.mubr.msk.f32.mxu1 %vm212_vm1, %v7500_v31 }
  0xc7   : > { %5416 = vmatmul.mubr.msk.f32.gmra.mxu0 %vm212_vm1, %v5844_v12  ;;  %v7506_v12 = vld [vmem:[#allocation15_spill] sm:$0xff] }
  0xc8   : > { %5366 = vmatmul.mubr.msk.f32.gmra.mxu1 %vm212_vm1, %v7501_v33  ;;  %5418 = vmatprep.mubr.msk.f32.mxu0 %vm212_vm1, %v5853_v14 }
  0xc9   : > { %5368 = vmatprep.mubr.msk.f32.mxu1 %vm212_vm1, %v7502_v35 }
  0xcb   : > { %5419 = vmatmul.mubr.msk.f32.gmra.mxu0 %vm212_vm1, %v5870_v16 }
  0xcc   : > { %5369 = vmatmul.mubr.msk.f32.gmra.mxu1 %vm212_vm1, %v7503_v4  ;;  %5421 = vmatprep.mubr.msk.f32.mxu0 %vm212_vm1, %v5876_v18  ;;  %v7508_v18 = vld [vmem:[#allocation17_spill] sm:$0xff] }
  0xcd   : > { %5371 = vmatprep.mubr.msk.f32.mxu1 %vm212_vm1, %v7504_v6 }
  0xcf   : > { %5422 = vmatmul.mubr.msk.f32.gmra.mxu0 %vm212_vm1, %v5890_v20 }
  0xd0   : > { %5372 = vmatmul.mubr.msk.f32.gmra.mxu1 %vm212_vm1, %v7505_v8  ;;  %5424 = vmatprep.mubr.msk.f32.mxu0 %vm212_vm1, %v5896_v22 }
  0xd1   : > { %5374 = vmatprep.mubr.msk.f32.mxu1 %vm212_vm1, %v7506_v12 }
  0xd3   : > { %v6532_v14 = vpop.f32.mrf.mxu0  ;;  %5425 = vmatmul.mubr.msk.f32.gmra.mxu0 %vm212_vm1, %v5910_v24  ;;  %v7511_v24 = vld [vmem:[#allocation19_spill] sm:$0xff] }
  0xd4   : > { %v6534_v16 = vpop.f32.mrf.mxu1  ;;  %5375 = vmatmul.mubr.msk.f32.gmra.mxu1 %vm212_vm1, %v7507_v51  ;;  %5427 = vmatprep.mubr.msk.f32.mxu0 %vm212_vm1, %v5916_v26 }
  0xd5   : > { %5377 = vmatprep.mubr.msk.f32.mxu1 %vm212_vm1, %v7508_v18  ;;  %v6544_v20 = vpop.f32.mrf.mxu0 }
  0xd6   : > { %v6546_v52 = vpop.f32.mrf.mxu1 }
  0xd7   : > { %v6548_v22 = vpop.f32.mrf.mxu0  ;;  %5428 = vmatmul.mubr.msk.f32.gmra.mxu0 %vm212_vm1, %v5930_v28  ;;  %v7515_v28 = vld [vmem:[#allocation21_spill] sm:$0xff] }
  0xd8   : > { %v6550_v53 = vpop.f32.mrf.mxu1  ;;  %5378 = vmatmul.mubr.msk.f32.gmra.mxu1 %vm212_vm1, %v7510_v54  ;;  %5430 = vmatprep.mubr.msk.f32.mxu0 %vm212_vm1, %v5936_v30 }
  0xd9   : > { %7509 = vst [vmem:[#allocation2_spill] sm:$0xff] %v6550_v53  ;;  %5380 = vmatprep.mubr.msk.f32.mxu1 %vm212_vm1, %v7511_v24  ;;  %v6560_v26 = vpop.f32.mrf.mxu0 }
  0xda   : > { %v6562_v56 = vpop.f32.mrf.mxu1 }
  0xdb   : > { %7512 = vst [vmem:[#allocation3_spill] sm:$0xff] %v6562_v56  ;;  %v6564_v58 = vpop.f32.mrf.mxu0  ;;  %5431 = vmatmul.mubr.msk.f32.gmra.mxu0 %vm212_vm1, %v5950_v32 }
  0xdc   : > { %v6566_v42 = vpop.f32.mrf.mxu1  ;;  %5381 = vmatmul.mubr.msk.f32.gmra.mxu1 %vm212_vm1, %v7514_v48  ;;  %5433 = vmatprep.mubr.msk.f32.mxu0 %vm212_vm1, %v5956_v34  ;;  %v7519_v34 = vld [vmem:[#allocation25_spill] sm:$0xff] }
  0xdd   : > { %7513 = vst [vmem:[#allocation4_spill] sm:$0xff] %v6566_v42  ;;  %5383 = vmatprep.mubr.msk.f32.mxu1 %vm212_vm1, %v7515_v28  ;;  %v6576_v30 = vpop.f32.mrf.mxu0 }
  0xde   : > { %v6578_v49 = vpop.f32.mrf.mxu1 }
  0xdf   : > { %7516 = vst [vmem:[#allocation5_spill] sm:$0xff] %v6578_v49  ;;  %v6585_v19 = vpop.f32.mrf.mxu0  ;;  %5434 = vmatmul.mubr.msk.f32.gmra.mxu0 %vm212_vm1, %v5970_v36 }
  0xe0   : > { %v5135_v15 = vpop.f32.mrf.mxu1  ;;  %5384 = vmatmul.mubr.msk.f32.gmra.mxu1 %vm212_vm1, %v7517_v62  ;;  %5436 = vmatprep.mubr.msk.f32.mxu0 %vm212_vm1, %v6417_v13  ;;  %v7522_v13 = vld [vmem:[#allocation27_spill] sm:$0xff] }
  0xe1   : > { %v6592_v32 = vadd.f32 %v5135_v15, %v6583_v44  ;;  %5386 = vmatprep.mubr.msk.f32.mxu1 %vm212_vm1, %v7519_v34  ;;  %v6598_v49 = vpop.f32.mrf.mxu0 }
  0xe2   : > { %v489_v42 = vpop.f32.mrf.mxu1 }
  0xe3   : > { %7518 = vst [vmem:[#allocation6_spill] sm:$0xff] %v6592_v32  ;;  %v6601_v60 = vadd.f32 %v6583_v44, %v489_v42  ;;  %v6603_v56 = vpop.f32.mrf.mxu0  ;;  %5437 = vmatmul.mubr.msk.f32.gmra.mxu0 %vm212_vm1, %v6431_v17  ;;  %v7525_v32 = vld [vmem:[#allocation28_spill] sm:$0xff] }
  0xe4   : > { %v5138_v36 = vpop.f32.mrf.mxu1  ;;  %5387 = vmatmul.mubr.msk.f32.gmra.mxu1 %vm212_vm1, %v6264_v38  ;;  %5439 = vmatprep.mubr.msk.f32.mxu0 %vm212_vm1, %v6437_v43  ;;  %v6619_v38 = vld [vmem:[%s5810_s23 + $0x184] sm:$0xff] }
  0xe5   : > { %7520 = vst [vmem:[#allocation7_spill] sm:$0xff] %v6601_v60  ;;  %v6610_v15 = vadd.f32 %v5138_v36, %v6583_v44  ;;  %5389 = vmatprep.mubr.msk.f32.mxu1 %vm212_vm1, %v7522_v13  ;;  %v6616_v42 = vpop.f32.mrf.mxu0  ;;  %7523 = vst [vmem:[#allocation9_spill] sm:$0xff] %v6619_v38  ;;  %v4596_v60 = vld [vmem:[%s5810_s23 + $0x1b0] sm:$0xff] }
  0xe6   : > { %v499_v34 = vpop.f32.mrf.mxu1  ;;  %v6638_v13 = vld [vmem:[%s5810_s23 + $0x18c] sm:$0xff] }
  0xe7   : > { %7521 = vst [vmem:[#allocation8_spill] sm:$0xff] %v6610_v15  ;;  %v6623_v17 = vadd.f32 %v6583_v44, %v499_v34  ;;  %v6625_v36 = vpop.f32.mrf.mxu0  ;;  %5440 = vmatmul.mubr.msk.f32.gmra.mxu0 %vm212_vm1, %v6451_v47  ;;  %7527 = vst [vmem:[#allocation12_spill] sm:$0xff] %v6638_v13  ;;  %v4597_v34 = vld [vmem:[%s5810_s23 + $0x1b8] sm:$0xff] }
  0xe8   : > { %v5141_v15 = vpop.f32.mrf.mxu1  ;;  %5390 = vmatmul.mubr.msk.f32.gmra.mxu1 %vm212_vm1, %v7525_v32  ;;  %5442 = vmatprep.mubr.msk.f32.mxu0 %vm212_vm1, %v4596_v60  ;;  %v6644_v32 = vld [vmem:[%s5810_s23 + $0x19c] sm:$0xff] }
  0xe9   : > { %7524 = vst [vmem:[#allocation10_spill] sm:$0xff] %v6623_v17  ;;  %v6632_v43 = vadd.f32 %v5141_v15, %v6583_v44  ;;  %5392 = vmatprep.mubr.msk.f32.mxu1 %vm212_vm1, %v6619_v38  ;;  %v6641_v17 = vpop.f32.mrf.mxu0  ;;  %v6662_v38 = vld [vmem:[%s5810_s23 + $0x1a4] sm:$0xff] }
  0xea   : > { %v509_v62 = vpop.f32.mrf.mxu1  ;;  %7530 = vst [vmem:[#allocation15_spill] sm:$0xff] %v6662_v38 }
  0xeb   : > { %7526 = vst [vmem:[#allocation11_spill] sm:$0xff] %v6632_v43  ;;  %v6648_v47 = vadd.f32 %v6583_v44, %v509_v62  ;;  %v6650_v15 = vpop.f32.mrf.mxu0  ;;  %5443 = vmatmul.mubr.msk.f32.gmra.mxu0 %vm212_vm1, %v4597_v34  ;;  %v4599_v62 = vld [vmem:[%s5810_s23 + $0x1d0] sm:$0xff] }
  0xec   : > { %v5144_v43 = vpop.f32.mrf.mxu1  ;;  %5393 = vmatmul.mubr.msk.f32.gmra.mxu1 %vm212_vm1, %v6638_v13  ;;  %5445 = vmatprep.mubr.msk.f32.mxu0 %vm212_vm1, %v4598_v2 }
  0xed   : > { %7528 = vst [vmem:[#allocation13_spill] sm:$0xff] %v6648_v47  ;;  %v6656_v60 = vadd.f32 %v5144_v43, %v6583_v44  ;;  %5395 = vmatprep.mubr.msk.f32.mxu1 %vm212_vm1, %v6644_v32  ;;  %v6665_v47 = vpop.f32.mrf.mxu0 }
  0xee   : > { %v519_v53 = vpop.f32.mrf.mxu1 }
  0xef   : > { %7529 = vst [vmem:[#allocation14_spill] sm:$0xff] %v6656_v60  ;;  %v6668_v28 = vadd.f32 %v6583_v44, %v519_v53  ;;  %v6670_v13 = vpop.f32.mrf.mxu0  ;;  %5446 = vmatmul.mubr.msk.f32.gmra.mxu0 %vm212_vm1, %v4599_v62 }
  0xf0   : > { %v5147_v34 = vpop.f32.mrf.mxu1  ;;  %5396 = vmatmul.mubr.msk.f32.gmra.mxu1 %vm212_vm1, %v6662_v38  ;;  %5500 = vmatprep.mubr.msk.f32.mxu0 %vm212_vm1, %v7494_v21 }
  0xf1   : > { %7531 = vst [vmem:[#allocation16_spill] sm:$0xff] %v6668_v28  ;;  %v6676_v43 = vadd.f32 %v5147_v34, %v6583_v44  ;;  %5450 = vmatprep.mubr.msk.f32.mxu1 %vm212_vm1, %v6047_v55  ;;  %v6682_v2 = vpop.f32.mrf.mxu0  ;;  %v539_v28 = vadd.f32 %v6532_v14, %v6583_v44  ;;  %v538_v55 = vadd.f32 %v6583_v44, %v6544_v20 }
  0xf2   : > { %v529_v53 = vpop.f32.mrf.mxu1 }
  0xf3   : > { %7532 = vst [vmem:[#allocation17_spill] sm:$0xff] %v6676_v43  ;;  %v6687_v60 = vadd.f32 %v6583_v44, %v529_v53  ;;  %v5202_v62 = vpop.f32.mrf.mxu0  ;;  %5501 = vmatmul.mubr.msk.f32.vlgmr.msra.gmra.mxu0 %vm212_vm1, %v7495_v23  ;;  %v541_v53 = vadd.f32 %v6548_v22, %v6583_v44 }
  0xf4   : > { %v5152_v38 = vpop.f32.mrf.mxu1  ;;  %5451 = vmatmul.mubr.msk.f32.vlgmr.msra.gmra.mxu1 %vm212_vm1, %v6061_v57  ;;  %5503 = vmatprep.mubr.msk.f32.mxu0 %vm212_vm1, %v7496_v50 }
  0xf5   : > { %7533 = vst [vmem:[#allocation18_spill] sm:$0xff] %v6687_v60  ;;  %v929_v21 = vadd.f32 %v5152_v38, %v539_v28  ;;  %5453 = vmatprep.mubr.msk.f32.mxu1 %vm212_vm1, %v6067_v59  ;;  %v1159_v34 = vpop.f32.mrf.mxu0  ;;  %v540_v59 = vadd.f32 %v6583_v44, %v6560_v26 }
  0xf6   : > { %v769_v14 = vpop.f32.mrf.mxu1 }
  0xf7   : > { %v6701_v60 = vadd.f32 %v5202_v62, %v929_v21  ;;  %v928_v57 = vadd.f32 %v769_v14, %v538_v55  ;;  %v5205_v23 = vpop.f32.mrf.mxu0  ;;  %5504 = vmatmul.mubr.msk.f32.gmra.mxu0 %vm212_vm1, %v7497_v25 }
  0xf8   : > { %v5155_v43 = vpop.f32.mrf.mxu1  ;;  %5454 = vmatmul.mubr.msk.f32.gmra.mxu1 %vm212_vm1, %v6081_v61  ;;  %5506 = vmatprep.mubr.msk.f32.mxu0 %vm212_vm1, %v7498_v27  ;;  %v543_v61 = vadd.f32 %v6564_v58, %v6583_v44 }
  0xf9   : > { %v6709_v50 = vadd.f32 %v1159_v34, %v928_v57  ;;  %v931_v20 = vadd.f32 %v5155_v43, %v541_v53  ;;  %5456 = vmatprep.mubr.msk.f32.mxu1 %vm212_vm1, %v6087_v63  ;;  %v1169_v28 = vpop.f32.mrf.mxu0  ;;  %v542_v63 = vadd.f32 %v6583_v44, %v6576_v30 }
  0xfa   : > { %v779_v22 = vpop.f32.mrf.mxu1 }
  0xfb   : > { %v6717_v38 = vadd.f32 %v5205_v23, %v931_v20  ;;  %v930_v25 = vadd.f32 %v779_v22, %v540_v59  ;;  %v5208_v55 = vpop.f32.mrf.mxu0  ;;  %5507 = vmatmul.mubr.msk.f32.gmra.mxu0 %vm212_vm1, %v7499_v29 }
  0xfc   : > { %v5158_v62 = vpop.f32.mrf.mxu1  ;;  %5457 = vmatmul.mubr.msk.f32.gmra.mxu1 %vm212_vm1, %v6101_v1  ;;  %5509 = vmatprep.mubr.msk.f32.mxu0 %vm212_vm1, %v7500_v31  ;;  %v545_v1 = vadd.f32 %v6585_v19, %v6583_v44 }
  0xfd   : > { %v6725_v27 = vadd.f32 %v1169_v28, %v930_v25  ;;  %v933_v26 = vadd.f32 %v5158_v62, %v543_v61  ;;  %5459 = vmatprep.mubr.msk.f32.mxu1 %vm212_vm1, %v6107_v3  ;;  %v1179_v43 = vpop.f32.mrf.mxu0  ;;  %v544_v3 = vadd.f32 %v6583_v44, %v6598_v49 }
  0xfe   : > { %v789_v58 = vpop.f32.mrf.mxu1 }
  0xff   : > { %v6733_v21 = vadd.f32 %v5208_v55, %v933_v26  ;;  %v932_v29 = vadd.f32 %v789_v58, %v542_v63  ;;  %v5211_v34 = vpop.f32.mrf.mxu0  ;;  %5510 = vmatmul.mubr.msk.f32.gmra.mxu0 %vm212_vm1, %v7501_v33 }
 0x100   : > { %v5161_v14 = vpop.f32.mrf.mxu1  ;;  %5460 = vmatmul.mubr.msk.f32.gmra.mxu1 %vm212_vm1, %v6121_v7  ;;  %5512 = vmatprep.mubr.msk.f32.mxu0 %vm212_vm1, %v7502_v35  ;;  %v547_v7 = vadd.f32 %v6603_v56, %v6583_v44 }
 0x101   : > { %v6741_v31 = vadd.f32 %v1179_v43, %v932_v29  ;;  %v935_v30 = vadd.f32 %v5161_v14, %v545_v1  ;;  %5462 = vmatprep.mubr.msk.f32.mxu1 %vm212_vm1, %v6127_v10  ;;  %v1189_v53 = vpop.f32.mrf.mxu0  ;;  %v546_v10 = vadd.f32 %v6583_v44, %v6616_v42 }
 0x102   : > { %v799_v19 = vpop.f32.mrf.mxu1 }
 0x103   : > { %v6749_v57 = vadd.f32 %v5211_v34, %v935_v30  ;;  %v934_v33 = vadd.f32 %v799_v19, %v544_v3  ;;  %v5214_v59 = vpop.f32.mrf.mxu0  ;;  %5513 = vmatmul.mubr.msk.f32.gmra.mxu0 %vm212_vm1, %v7503_v4 }
 0x104   : > { %v5164_v23 = vpop.f32.mrf.mxu1  ;;  %5463 = vmatmul.mubr.msk.f32.gmra.mxu1 %vm212_vm1, %v6141_v37  ;;  %5515 = vmatprep.mubr.msk.f32.mxu0 %vm212_vm1, %v7504_v6  ;;  %v549_v37 = vadd.f32 %v6625_v36, %v6583_v44 }
 0x105   : > { %v6757_v49 = vadd.f32 %v1189_v53, %v934_v33  ;;  %v937_v35 = vadd.f32 %v5164_v23, %v547_v7  ;;  %5465 = vmatprep.mubr.msk.f32.mxu1 %vm212_vm1, %v6147_v39  ;;  %v1199_v20 = vpop.f32.mrf.mxu0  ;;  %v548_v39 = vadd.f32 %v6583_v44, %v6641_v17  ;;  %v4720_v53 = vld [vmem:[%s5810_s23 + $0x154] sm:$0xff] }
 0x106   : > { %v809_v56 = vpop.f32.mrf.mxu1 }
 0x107   : > { %v6765_v22 = vadd.f32 %v5214_v59, %v937_v35  ;;  %v936_v4 = vadd.f32 %v809_v56, %v546_v10  ;;  %v5217_v61 = vpop.f32.mrf.mxu0  ;;  %5516 = vmatmul.mubr.msk.f32.gmra.mxu0 %vm212_vm1, %v7505_v8  ;;  %v7536_v59 = vld [vmem:[#allocation22_spill] sm:$0xff]  ;;  %v7538_v10 = vld [vmem:[#allocation3_spill] sm:$0xff] }
 0x108   : > { %v5167_v28 = vpop.f32.mrf.mxu1  ;;  %5466 = vmatmul.mubr.msk.f32.gmra.mxu1 %vm212_vm1, %v6161_v41  ;;  %5518 = vmatprep.mubr.msk.f32.mxu0 %vm212_vm1, %v7506_v12  ;;  %v551_v41 = vadd.f32 %v6650_v15, %v6583_v44  ;;  %v556_v35 = vadd.f32 %v6583_v44, %v7538_v10  ;;  %v7550_v10 = vld [vmem:[#allocation31_spill] sm:$0xff] }
 0x109   : > { %v6773_v6 = vadd.f32 %v1199_v20, %v936_v4  ;;  %v939_v42 = vadd.f32 %v5167_v28, %v549_v37  ;;  %5468 = vmatprep.mubr.msk.f32.mxu1 %vm212_vm1, %v6167_v45  ;;  %v1209_v25 = vpop.f32.mrf.mxu0  ;;  %v550_v45 = vadd.f32 %v6583_v44, %v6665_v47  ;;  %v7539_v37 = vld [vmem:[#allocation24_spill] sm:$0xff]  ;;  %v4721_v4 = vld [vmem:[%s5810_s23 + $0x15c] sm:$0xff] }
 0x10a   : > { %v819_v36 = vpop.f32.mrf.mxu1 }
 0x10b   : > { %v6781_v62 = vadd.f32 %v5217_v61, %v939_v42  ;;  %v938_v8 = vadd.f32 %v819_v36, %v548_v39  ;;  %v5220_v63 = vpop.f32.mrf.mxu0  ;;  %5519 = vmatmul.mubr.msk.f32.gmra.mxu0 %vm212_vm1, %v7507_v51  ;;  %v4656_v39 = vld [vmem:[%s5810_s23 + $0x16a] sm:$0xff] }
 0x10c   : > { %v5170_v55 = vpop.f32.mrf.mxu1  ;;  %5469 = vmatmul.mubr.msk.f32.gmra.mxu1 %vm212_vm1, %v6181_v40  ;;  %5521 = vmatprep.mubr.msk.f32.mxu0 %vm212_vm1, %v7508_v18  ;;  %v553_v40 = vadd.f32 %v6670_v13, %v6583_v44  ;;  %v4722_v42 = vld [vmem:[%s5810_s23 + $0x16c] sm:$0xff] }
 0x10d   : > { %v6789_v12 = vadd.f32 %v1209_v25, %v938_v8  ;;  %v941_v17 = vadd.f32 %v5170_v55, %v551_v41  ;;  %5471 = vmatprep.mubr.msk.f32.mxu1 %vm212_vm1, %v6187_v11  ;;  %v1219_v26 = vpop.f32.mrf.mxu0  ;;  %v552_v11 = vadd.f32 %v6583_v44, %v6682_v2  ;;  %v7540_v36 = vld [vmem:[#allocation4_spill] sm:$0xff] }
 0x10e   : > { %v829_v15 = vpop.f32.mrf.mxu1  ;;  %v559_v25 = vadd.f32 %v7540_v36, %v6583_v44 }
 0x10f   : > { %v6797_v58 = vadd.f32 %v5220_v63, %v941_v17  ;;  %v940_v51 = vadd.f32 %v829_v15, %v550_v45  ;;  %v5223_v1 = vpop.f32.mrf.mxu0  ;;  %5522 = vmatmul.mubr.msk.f32.gmra.mxu0 %vm212_vm1, %v7510_v54  ;;  %v7541_v45 = vld [vmem:[#allocation26_spill] sm:$0xff]  ;;  %v7542_v17 = vld [vmem:[#allocation5_spill] sm:$0xff] }
 0x110   : > { %v5173_v43 = vpop.f32.mrf.mxu1  ;;  %5472 = vmatmul.mubr.msk.f32.gmra.mxu1 %vm212_vm1, %v6201_v46  ;;  %5524 = vmatprep.mubr.msk.f32.mxu0 %vm212_vm1, %v7511_v24  ;;  %v555_v46 = vadd.f32 %v6534_v16, %v6583_v44  ;;  %v7534_v16 = vld [vmem:[#allocation21_spill] sm:$0xff]  ;;  %v558_v15 = vadd.f32 %v6583_v44, %v7542_v17 }
 0x111   : > { %v6805_v18 = vadd.f32 %v1219_v26, %v940_v51  ;;  %v943_v47 = vadd.f32 %v5173_v43, %v553_v40  ;;  %5474 = vmatprep.mubr.msk.f32.mxu1 %vm212_vm1, %v6207_v5  ;;  %v1229_v29 = vpop.f32.mrf.mxu0  ;;  %v554_v5 = vadd.f32 %v6583_v44, %v6546_v52  ;;  %v4657_v51 = vld [vmem:[%s5810_s23 + $0x172] sm:$0xff]  ;;  %v4729_v17 = vld [vmem:[%s5810_s23 + $0x1bc] sm:$0xff] }
 0x112   : > { %v839_v13 = vpop.f32.mrf.mxu1  ;;  %v4723_v43 = vld [vmem:[%s5810_s23 + $0x174] sm:$0xff] }
 0x113   : > { %v6813_v14 = vadd.f32 %v5223_v1, %v943_v47  ;;  %v942_v54 = vadd.f32 %v839_v13, %v552_v11  ;;  %v5226_v2 = vpop.f32.mrf.mxu0  ;;  %5525 = vmatmul.mubr.msk.f32.gmra.mxu0 %vm212_vm1, %v7514_v48 }
 0x114   : > { %v5176_v34 = vpop.f32.mrf.mxu1  ;;  %5475 = vmatmul.mubr.msk.f32.gmra.mxu1 %vm212_vm1, %v6221_v9  ;;  %5527 = vmatprep.mubr.msk.f32.mxu0 %vm212_vm1, %v7534_v16  ;;  %v7535_v9 = vld [vmem:[#allocation2_spill] sm:$0xff] }
 0x115   : > { %v6821_v24 = vadd.f32 %v1229_v29, %v942_v54  ;;  %v945_v3 = vadd.f32 %v5176_v34, %v555_v46  ;;  %5477 = vmatprep.mubr.msk.f32.mxu1 %vm212_vm1, %v6227_v0  ;;  %v1239_v19 = vpop.f32.mrf.mxu0  ;;  %v557_v48 = vadd.f32 %v7535_v9, %v6583_v44  ;;  %v7537_v0 = vld [vmem:[#allocation23_spill] sm:$0xff]  ;;  %v7543_v54 = vld [vmem:[#allocation6_spill] sm:$0xff] }
 0x116   : > { %v849_v30 = vpop.f32.mrf.mxu1 }
 0x117   : > { %v6830_v7 = vadd.f32 %v5226_v2, %v945_v3  ;;  %v944_v52 = vadd.f32 %v849_v30, %v554_v5  ;;  %v5229_v23 = vpop.f32.mrf.mxu0  ;;  %5528 = vmatmul.mubr.msk.f32.gmra.mxu0 %vm212_vm1, %v7537_v0  ;;  %v7544_v2 = vld [vmem:[#allocation29_spill] sm:$0xff] }
 0x118   : > { %v5179_v33 = vpop.f32.mrf.mxu1  ;;  %5478 = vmatmul.mubr.msk.f32.gmra.mxu1 %vm212_vm1, %v7536_v59  ;;  %5530 = vmatprep.mubr.msk.f32.mxu0 %vm212_vm1, %v4720_v53  ;;  %v7545_v5 = vld [vmem:[#allocation9_spill] sm:$0xff]  ;;  %v7549_v59 = vld [vmem:[#allocation8_spill] sm:$0xff] }
 0x119   : > { %v6838_v56 = vadd.f32 %v1239_v19, %v944_v52  ;;  %v947_v20 = vadd.f32 %v5179_v33, %v557_v48  ;;  %5480 = vmatprep.mubr.msk.f32.mxu1 %vm212_vm1, %v7539_v37  ;;  %v1249_v61 = vpop.f32.mrf.mxu0  ;;  %v7546_v19 = vld [vmem:[#allocation7_spill] sm:$0xff]  ;;  %v7547_v52 = vld [vmem:[#allocation30_spill] sm:$0xff]  ;;  %v7548_v33 = vld [vmem:[#allocation12_spill] sm:$0xff] }
 0x11a   : > { %v859_v28 = vpop.f32.mrf.mxu1  ;;  %v4662_v37 = vld [vmem:[%s5810_s23 + $0x1b2] sm:$0xff] }
 0x11b   : > { %v6848_v41 = vadd.f32 %v5229_v23, %v947_v20  ;;  %v946_v8 = vadd.f32 %v859_v28, %v556_v35  ;;  %v5232_v63 = vpop.f32.mrf.mxu0  ;;  %5531 = vmatmul.mubr.msk.f32.gmra.mxu0 %vm212_vm1, %v4721_v4  ;;  %v4728_v4 = vld [vmem:[%s5810_s23 + $0x1b4] sm:$0xff] }
 0x11c   : > { %v5182_v55 = vpop.f32.mrf.mxu1  ;;  %5481 = vmatmul.mubr.msk.f32.gmra.mxu1 %vm212_vm1, %v7541_v45  ;;  %5533 = vmatprep.mubr.msk.f32.mxu0 %vm212_vm1, %v4722_v42  ;;  %v4663_v45 = vld [vmem:[%s5810_s23 + $0x1ba] sm:$0xff] }
 0x11d   : > { %v6855_v26 = vadd.f32 %v1249_v61, %v946_v8  ;;  %v949_v40 = vadd.f32 %v5182_v55, %v559_v25  ;;  %5483 = vmatprep.mubr.msk.f32.mxu1 %vm212_vm1, %v4656_v39  ;;  %v1259_v11 = vpop.f32.mrf.mxu0  ;;  %v7551_v61 = vld [vmem:[#allocation10_spill] sm:$0xff]  ;;  %v7552_v25 = vld [vmem:[#allocation32_spill] sm:$0xff]  ;;  %v7553_v8 = vld [vmem:[#allocation15_spill] sm:$0xff] }
 0x11e   : > { %v869_v1 = vpop.f32.mrf.mxu1  ;;  %v7554_v55 = vld [vmem:[#allocation11_spill] sm:$0xff] }
 0x11f   : > { %v6861_v47 = vadd.f32 %v5232_v63, %v949_v40  ;;  %v948_v13 = vadd.f32 %v869_v1, %v558_v15  ;;  %v5235_v46 = vpop.f32.mrf.mxu0  ;;  %5534 = vmatmul.mubr.msk.f32.gmra.mxu0 %vm212_vm1, %v4723_v43  ;;  %v4730_v43 = vld [vmem:[%s5810_s23 + $0x1cc] sm:$0xff] }
 0x120   : > { %v5185_v29 = vpop.f32.mrf.mxu1  ;;  %5484 = vmatmul.mubr.msk.f32.gmra.mxu1 %vm212_vm1, %v4657_v51  ;;  %5536 = vmatprep.mubr.msk.f32.mxu0 %vm212_vm1, %v7545_v5  ;;  %v4664_v51 = vld [vmem:[%s5810_s23 + $0x1ca] sm:$0xff]  ;;  %v4665_v5 = vld [vmem:[%s5810_s23 + $0x1d2] sm:$0xff] }
 0x121   : > { %v6865_v44 = vadd.f32 %v1259_v11, %v948_v13  ;;  %v951_v34 = vadd.f32 %v5185_v29, %v7543_v54  ;;  %5486 = vmatprep.mubr.msk.f32.mxu1 %vm212_vm1, %v7544_v2  ;;  %v1269_v16 = vpop.f32.mrf.mxu0  ;;  %v7555_v11 = vld [vmem:[#allocation13_spill] sm:$0xff] }
 0x122   : > { %v879_v3 = vpop.f32.mrf.mxu1 }
 0x123   : > { %v6872_v30 = vadd.f32 %v5235_v46, %v951_v34  ;;  %v950_v53 = vadd.f32 %v879_v3, %v7546_v19  ;;  %v5238_v48 = vpop.f32.mrf.mxu0  ;;  %5537 = vmatmul.mubr.msk.f32.gmra.mxu0 %vm212_vm1, %v7548_v33  ;;  %v7556_v34 = vld [vmem:[#allocation14_spill] sm:$0xff]  ;;  %v4731_v3 = vld [vmem:[%s5810_s23 + $0x1d4] sm:$0xff] }
 0x124   : > { %v5188_v9 = vpop.f32.mrf.mxu1  ;;  %5487 = vmatmul.mubr.msk.f32.gmra.mxu1 %vm212_vm1, %v7547_v52  ;;  %5539 = vmatprep.mubr.msk.f32.mxu0 %vm212_vm1, %v6644_v32 }
 0x125   : > { %v6879_v23 = vadd.f32 %v1269_v16, %v950_v53  ;;  %v953_v0 = vadd.f32 %v5188_v9, %v7549_v59  ;;  %5489 = vmatprep.mubr.msk.f32.mxu1 %vm212_vm1, %v7550_v10  ;;  %v1279_v20 = vpop.f32.mrf.mxu0  ;;  %v7557_v9 = vld [vmem:[#allocation16_spill] sm:$0xff] }
 0x126   : > { %v889_v35 = vpop.f32.mrf.mxu1 }
 0x127   : > { %v6888_v28 = vadd.f32 %v5238_v48, %v953_v0  ;;  %v952_v39 = vadd.f32 %v889_v35, %v7551_v61  ;;  %v5241_v36 = vpop.f32.mrf.mxu0  ;;  %5540 = vmatmul.mubr.msk.f32.gmra.mxu0 %vm212_vm1, %v7553_v8  ;;  %v7558_v0 = vld [vmem:[#allocation17_spill] sm:$0xff] }
 0x128   : > { %v5191_v42 = vpop.f32.mrf.mxu1  ;;  %5490 = vmatmul.mubr.msk.f32.gmra.mxu1 %vm212_vm1, %v7552_v25  ;;  %5542 = vmatprep.mubr.msk.f32.mxu0 %vm212_vm1, %v4728_v4  ;;  %v7559_v4 = vld [vmem:[#allocation18_spill] sm:$0xff] }
 0x129   : > { %v6895_v32 = vadd.f32 %v1279_v20, %v952_v39  ;;  %v955_v63 = vadd.f32 %v5191_v42, %v7554_v55  ;;  %5492 = vmatprep.mubr.msk.f32.mxu1 %vm212_vm1, %v4662_v37  ;;  %v1289_v40 = vpop.f32.mrf.mxu0 }
 0x12a   : > { %v899_v15 = vpop.f32.mrf.mxu1 }
 0x12b   : > { %v6904_v1 = vadd.f32 %v5241_v36, %v955_v63  ;;  %v954_v13 = vadd.f32 %v899_v15, %v7555_v11  ;;  %v5244_v46 = vpop.f32.mrf.mxu0  ;;  %5543 = vmatmul.mubr.msk.f32.gmra.mxu0 %vm212_vm1, %v4729_v17 }
 0x12c   : > { %v5194_v29 = vpop.f32.mrf.mxu1  ;;  %5493 = vmatmul.mubr.msk.f32.gmra.mxu1 %vm212_vm1, %v4663_v45  ;;  %5545 = vmatprep.mubr.msk.f32.mxu0 %vm212_vm1, %v4730_v43 }
 0x12d   : > { %v6909_v54 = vadd.f32 %v1289_v40, %v954_v13  ;;  %v957_v2 = vadd.f32 %v5194_v29, %v7556_v34  ;;  %5495 = vmatprep.mubr.msk.f32.mxu1 %vm212_vm1, %v4664_v51  ;;  %v1299_v19 = vpop.f32.mrf.mxu0 }
 0x12e   : > { %v909_v16 = vpop.f32.mrf.mxu1 }
 0x12f   : > { %v6916_v53 = vadd.f32 %v5244_v46, %v957_v2  ;;  %v956_v48 = vadd.f32 %v909_v16, %v7557_v9  ;;  %v5247_v33 = vpop.f32.mrf.mxu0  ;;  %5546 = vmatmul.mubr.msk.f32.gmra.mxu0 %vm212_vm1, %v4731_v3 }
 0x130   : > { %v5197_v52 = vpop.f32.mrf.mxu1  ;;  %5496 = vmatmul.mubr.msk.f32.gmra.mxu1 %vm212_vm1, %v4665_v5 }
 0x131   : > { %v6921_v59 = vadd.f32 %v1299_v19, %v956_v48  ;;  %v959_v10 = vadd.f32 %v5197_v52, %v7558_v0  ;;  %v1309_v20 = vpop.f32.mrf.mxu0 }
 0x132   : > { %v919_v35 = vpop.f32.mrf.mxu1 }
 0x133   : > { %v6924_v37 = vadd.f32 %v5247_v33, %v959_v10  ;;  %v958_v61 = vadd.f32 %v919_v35, %v7559_v4  ;;  %v5302_v42 = vpop.f32.mrf.mxu0 }
 0x134   : > { %v5252_v39 = vpop.f32.mrf.mxu1 }
 0x135   : > { %v6927_v36 = vadd.f32 %v1309_v20, %v958_v61  ;;  %v1710_v25 = vadd.f32 %v5252_v39, %v6701_v60  ;;  %v1940_v55 = vpop.f32.mrf.mxu0 }
 0x136   : > { %v1550_v8 = vpop.f32.mrf.mxu1 }
 0x137   : > { %v6930_v63 = vadd.f32 %v5302_v42, %v1710_v25  ;;  %v1709_v45 = vadd.f32 %v1550_v8, %v6709_v50  ;;  %v5305_v15 = vpop.f32.mrf.mxu0 }
 0x138   : > { %v5255_v17 = vpop.f32.mrf.mxu1 }
 0x139   : > { %v6933_v40 = vadd.f32 %v1940_v55, %v1709_v45  ;;  %v1712_v51 = vadd.f32 %v5255_v17, %v6717_v38  ;;  %v1950_v11 = vpop.f32.mrf.mxu0 }
 0x13a   : > { %v1560_v43 = vpop.f32.mrf.mxu1 }
 0x13b   : > { %v6936_v13 = vadd.f32 %v5305_v15, %v1712_v51  ;;  %v1711_v29 = vadd.f32 %v1560_v43, %v6725_v27  ;;  %v5308_v60 = vpop.f32.mrf.mxu0 }
 0x13c   : > { %v5258_v46 = vpop.f32.mrf.mxu1 }
 0x13d   : > { %v6939_v34 = vadd.f32 %v1950_v11, %v1711_v29  ;;  %v1714_v2 = vadd.f32 %v5258_v46, %v6733_v21  ;;  %v1960_v50 = vpop.f32.mrf.mxu0 }
 0x13e   : > { %v1570_v5 = vpop.f32.mrf.mxu1 }
 0x13f   : > { %v6942_v3 = vadd.f32 %v5308_v60, %v1714_v2  ;;  %v1713_v16 = vadd.f32 %v1570_v5, %v6741_v31  ;;  %v5311_v38 = vpop.f32.mrf.mxu0 }
 0x140   : > { %v5261_v19 = vpop.f32.mrf.mxu1 }
 0x141   : > { %v6945_v9 = vadd.f32 %v1960_v50, %v1713_v16  ;;  %v1716_v48 = vadd.f32 %v5261_v19, %v6749_v57  ;;  %v1970_v27 = vpop.f32.mrf.mxu0 }
 0x142   : > { %v1580_v52 = vpop.f32.mrf.mxu1 }
 0x143   : > { %v6948_v33 = vadd.f32 %v5311_v38, %v1716_v48  ;;  %v1715_v0 = vadd.f32 %v1580_v52, %v6757_v49  ;;  %v5314_v21 = vpop.f32.mrf.mxu0 }
 0x144   : > { %v5264_v10 = vpop.f32.mrf.mxu1 }
 0x145   : > { %v6951_v35 = vadd.f32 %v1970_v27, %v1715_v0  ;;  %v1718_v20 = vadd.f32 %v5264_v10, %v6765_v22  ;;  %v1980_v31 = vpop.f32.mrf.mxu0 }
 0x146   : > { %v1590_v4 = vpop.f32.mrf.mxu1 }
 0x147   : > { %v6954_v61 = vadd.f32 %v5314_v21, %v1718_v20  ;;  %v1717_v39 = vadd.f32 %v1590_v4, %v6773_v6  ;;  %v5317_v57 = vpop.f32.mrf.mxu0 }
 0x148   : > { %v5267_v42 = vpop.f32.mrf.mxu1 }
 0x149   : > { %v6957_v25 = vadd.f32 %v1980_v31, %v1717_v39  ;;  %v1720_v8 = vadd.f32 %v5267_v42, %v6781_v62  ;;  %v1990_v49 = vpop.f32.mrf.mxu0 }
 0x14a   : > { %v1600_v55 = vpop.f32.mrf.mxu1 }
 0x14b   : > { %v6960_v45 = vadd.f32 %v5317_v57, %v1720_v8  ;;  %v1719_v17 = vadd.f32 %v1600_v55, %v6789_v12  ;;  %v5320_v22 = vpop.f32.mrf.mxu0 }
 0x14c   : > { %v5270_v15 = vpop.f32.mrf.mxu1 }
 0x14d   : > { %v6963_v51 = vadd.f32 %v1990_v49, %v1719_v17  ;;  %v1722_v43 = vadd.f32 %v5270_v15, %v6797_v58  ;;  %v2000_v6 = vpop.f32.mrf.mxu0 }
 0x14e   : > { %v1610_v11 = vpop.f32.mrf.mxu1 }
 0x14f   : > { %v6966_v29 = vadd.f32 %v5320_v22, %v1722_v43  ;;  %v1721_v46 = vadd.f32 %v1610_v11, %v6805_v18  ;;  %v5323_v62 = vpop.f32.mrf.mxu0 }
 0x150   : > { %v5273_v60 = vpop.f32.mrf.mxu1 }
 0x151   : > { %v6969_v2 = vadd.f32 %v2000_v6, %v1721_v46  ;;  %v1724_v5 = vadd.f32 %v5273_v60, %v6813_v14  ;;  %v2010_v12 = vpop.f32.mrf.mxu0 }
 0x152   : > { %v1620_v50 = vpop.f32.mrf.mxu1 }
 0x153   : > { %v6972_v16 = vadd.f32 %v5323_v62, %v1724_v5  ;;  %v1723_v19 = vadd.f32 %v1620_v50, %v6821_v24  ;;  %v5326_v58 = vpop.f32.mrf.mxu0 }
 0x154   : > { %v5276_v38 = vpop.f32.mrf.mxu1 }
 0x155   : > { %v6975_v48 = vadd.f32 %v2010_v12, %v1723_v19  ;;  %v1726_v52 = vadd.f32 %v5276_v38, %v6830_v7  ;;  %v2020_v18 = vpop.f32.mrf.mxu0 }
 0x156   : > { %v1630_v27 = vpop.f32.mrf.mxu1 }
 0x157   : > { %v6978_v0 = vadd.f32 %v5326_v58, %v1726_v52  ;;  %v1725_v10 = vadd.f32 %v1630_v27, %v6838_v56  ;;  %v5329_v14 = vpop.f32.mrf.mxu0 }
 0x158   : > { %v5279_v21 = vpop.f32.mrf.mxu1 }
 0x159   : > { %v6981_v20 = vadd.f32 %v2020_v18, %v1725_v10  ;;  %v1728_v4 = vadd.f32 %v5279_v21, %v6848_v41  ;;  %v2030_v24 = vpop.f32.mrf.mxu0 }
 0x15a   : > { %v1640_v31 = vpop.f32.mrf.mxu1 }
 0x15b   : > { %v6984_v39 = vadd.f32 %v5329_v14, %v1728_v4  ;;  %v1727_v42 = vadd.f32 %v1640_v31, %v6855_v26  ;;  %v5332_v7 = vpop.f32.mrf.mxu0 }
 0x15c   : > { %v5282_v57 = vpop.f32.mrf.mxu1 }
 0x15d   : > { %v6987_v8 = vadd.f32 %v2030_v24, %v1727_v42  ;;  %v1730_v55 = vadd.f32 %v5282_v57, %v6861_v47  ;;  %v2040_v56 = vpop.f32.mrf.mxu0 }
 0x15e   : > { %v1650_v49 = vpop.f32.mrf.mxu1 }
 0x15f   : > { %v6990_v17 = vadd.f32 %v5332_v7, %v1730_v55  ;;  %v1729_v15 = vadd.f32 %v1650_v49, %v6865_v44  ;;  %v5335_v41 = vpop.f32.mrf.mxu0 }
 0x160   : > { %v5285_v22 = vpop.f32.mrf.mxu1 }
 0x161   : > { %v6993_v43 = vadd.f32 %v2040_v56, %v1729_v15  ;;  %v1732_v11 = vadd.f32 %v5285_v22, %v6872_v30  ;;  %v2050_v26 = vpop.f32.mrf.mxu0 }
 0x162   : > { %v1660_v6 = vpop.f32.mrf.mxu1 }
 0x163   : > { %v6996_v46 = vadd.f32 %v5335_v41, %v1732_v11  ;;  %v1731_v60 = vadd.f32 %v1660_v6, %v6879_v23  ;;  %v5338_v47 = vpop.f32.mrf.mxu0 }
 0x164   : > { %v5288_v62 = vpop.f32.mrf.mxu1 }
 0x165   : > { %v6999_v5 = vadd.f32 %v2050_v26, %v1731_v60  ;;  %v1734_v50 = vadd.f32 %v5288_v62, %v6888_v28  ;;  %v2060_v44 = vpop.f32.mrf.mxu0 }
 0x166   : > { %v1670_v12 = vpop.f32.mrf.mxu1 }
 0x167   : > { %v7002_v19 = vadd.f32 %v5338_v47, %v1734_v50  ;;  %v1733_v38 = vadd.f32 %v1670_v12, %v6895_v32  ;;  %v5341_v30 = vpop.f32.mrf.mxu0 }
 0x168   : > { %v5291_v58 = vpop.f32.mrf.mxu1 }
 0x169   : > { %v7005_v52 = vadd.f32 %v2060_v44, %v1733_v38  ;;  %v1736_v27 = vadd.f32 %v5291_v58, %v6904_v1  ;;  %v2070_v23 = vpop.f32.mrf.mxu0 }
 0x16a   : > { %v1680_v18 = vpop.f32.mrf.mxu1 }
 0x16b   : > { %v7008_v10 = vadd.f32 %v5341_v30, %v1736_v27  ;;  %v1735_v21 = vadd.f32 %v1680_v18, %v6909_v54  ;;  %v5344_v28 = vpop.f32.mrf.mxu0 }
 0x16c   : > { %v5294_v14 = vpop.f32.mrf.mxu1 }
 0x16d   : > { %v7011_v4 = vadd.f32 %v2070_v23, %v1735_v21  ;;  %v1738_v31 = vadd.f32 %v5294_v14, %v6916_v53  ;;  %v2080_v32 = vpop.f32.mrf.mxu0 }
 0x16e   : > { %v1690_v24 = vpop.f32.mrf.mxu1 }
 0x16f   : > { %v7014_v42 = vadd.f32 %v5344_v28, %v1738_v31  ;;  %v1737_v57 = vadd.f32 %v1690_v24, %v6921_v59  ;;  %v5347_v1 = vpop.f32.mrf.mxu0 }
 0x170   : > { %v5297_v7 = vpop.f32.mrf.mxu1 }
 0x171   : > { %v7017_v55 = vadd.f32 %v2080_v32, %v1737_v57  ;;  %v1740_v49 = vadd.f32 %v5297_v7, %v6924_v37  ;;  %v2090_v54 = vpop.f32.mrf.mxu0 }
 0x172   : > { %v1700_v56 = vpop.f32.mrf.mxu1 }
 0x173   : > { %v7020_v15 = vadd.f32 %v5347_v1, %v1740_v49  ;;  %v1739_v22 = vadd.f32 %v1700_v56, %v6927_v36  ;;  %v7025_v53 = vpop.f32.mrf.mxu0 }
 0x174   : > { %v7023_v41 = vpop.f32.mrf.mxu1 }
 0x175   : > { %v7027_v11 = vadd.f32 %v2090_v54, %v1739_v22  ;;  %v7031_v59 = vpop.f32.mrf.mxu0 }
 0x176   : > { %v7029_v6 = vpop.f32.mrf.mxu1 }
 0x177   : > { %v7035_v60 = vpop.f32.mrf.mxu0 }
 0x178   : > { %v7033_v26 = vpop.f32.mrf.mxu1 }
 0x179   : > { %v7039_v62 = vpop.f32.mrf.mxu0 }
 0x17a   : > { %v7037_v37 = vpop.f32.mrf.mxu1 }
 0x17b   : > { %v5408_v36 = vpop.f32.mrf.mxu0 }
 0x17c   : > { %v5358_v47 = vpop.f32.mrf.mxu1 }
 0x17d   : > { %v2494_v50 = vadd.f32 %v5358_v47, %v6942_v3  ;;  %v7044_v44 = vpop.f32.mrf.mxu0 }
 0x17e   : > { %v7042_v12 = vpop.f32.mrf.mxu1 }
 0x17f   : > { %v7046_v38 = vadd.f32 %v5408_v36, %v2494_v50  ;;  %v5411_v30 = vpop.f32.mrf.mxu0 }
 0x180   : > { %v5361_v58 = vpop.f32.mrf.mxu1 }
 0x181   : > { %v2496_v27 = vadd.f32 %v5361_v58, %v6948_v33  ;;  %v7051_v23 = vpop.f32.mrf.mxu0 }
 0x182   : > { %v7049_v18 = vpop.f32.mrf.mxu1 }
 0x183   : > { %v7053_v21 = vadd.f32 %v5411_v30, %v2496_v27  ;;  %v5414_v28 = vpop.f32.mrf.mxu0 }
 0x184   : > { %v5364_v14 = vpop.f32.mrf.mxu1 }
 0x185   : > { %v2498_v3 = vadd.f32 %v5364_v14, %v6954_v61  ;;  %v2761_v24 = vpop.f32.mrf.mxu0 }
 0x186   : > { %v2370_v31 = vpop.f32.mrf.mxu1 }
 0x187   : > { %v7056_v32 = vadd.f32 %v5414_v28, %v2498_v3  ;;  %v2497_v57 = vadd.f32 %v2370_v31, %v6957_v25  ;;  %v5417_v1 = vpop.f32.mrf.mxu0 }
 0x188   : > { %v5367_v7 = vpop.f32.mrf.mxu1 }
 0x189   : > { %v7059_v49 = vadd.f32 %v2761_v24, %v2497_v57  ;;  %v2500_v33 = vadd.f32 %v5367_v7, %v6960_v45  ;;  %v2771_v54 = vpop.f32.mrf.mxu0 }
 0x18a   : > { %v2380_v56 = vpop.f32.mrf.mxu1 }
 0x18b   : > { %v7062_v22 = vadd.f32 %v5417_v1, %v2500_v33  ;;  %v2499_v47 = vadd.f32 %v2380_v56, %v6963_v51  ;;  %v5420_v61 = vpop.f32.mrf.mxu0 }
 0x18c   : > { %v5370_v36 = vpop.f32.mrf.mxu1 }
 0x18d   : > { %v7065_v50 = vadd.f32 %v2771_v54, %v2499_v47  ;;  %v2502_v58 = vadd.f32 %v5370_v36, %v6966_v29  ;;  %v2781_v25 = vpop.f32.mrf.mxu0 }
 0x18e   : > { %v2390_v30 = vpop.f32.mrf.mxu1 }
 0x18f   : > { %v7068_v27 = vadd.f32 %v5420_v61, %v2502_v58  ;;  %v2501_v14 = vadd.f32 %v2390_v30, %v6969_v2  ;;  %v5423_v45 = vpop.f32.mrf.mxu0 }
 0x190   : > { %v5373_v28 = vpop.f32.mrf.mxu1 }
 0x191   : > { %v7071_v3 = vadd.f32 %v2781_v25, %v2501_v14  ;;  %v2504_v31 = vadd.f32 %v5373_v28, %v6972_v16  ;;  %v2791_v51 = vpop.f32.mrf.mxu0 }
 0x192   : > { %v2400_v24 = vpop.f32.mrf.mxu1 }
 0x193   : > { %v7074_v57 = vadd.f32 %v5423_v45, %v2504_v31  ;;  %v2503_v7 = vadd.f32 %v2400_v24, %v6975_v48  ;;  %v5426_v29 = vpop.f32.mrf.mxu0 }
 0x194   : > { %v5376_v1 = vpop.f32.mrf.mxu1 }
 0x195   : > { %v7077_v33 = vadd.f32 %v2791_v51, %v2503_v7  ;;  %v2506_v56 = vadd.f32 %v5376_v1, %v6978_v0  ;;  %v2801_v2 = vpop.f32.mrf.mxu0 }
 0x196   : > { %v2410_v54 = vpop.f32.mrf.mxu1 }
 0x197   : > { %v7080_v47 = vadd.f32 %v5426_v29, %v2506_v56  ;;  %v2505_v36 = vadd.f32 %v2410_v54, %v6981_v20  ;;  %v5429_v16 = vpop.f32.mrf.mxu0 }
 0x198   : > { %v5379_v61 = vpop.f32.mrf.mxu1 }
 0x199   : > { %v7083_v58 = vadd.f32 %v2801_v2, %v2505_v36  ;;  %v2508_v30 = vadd.f32 %v5379_v61, %v6984_v39  ;;  %v2811_v48 = vpop.f32.mrf.mxu0 }
 0x19a   : > { %v2420_v25 = vpop.f32.mrf.mxu1 }
 0x19b   : > { %v7086_v14 = vadd.f32 %v5429_v16, %v2508_v30  ;;  %v2507_v28 = vadd.f32 %v2420_v25, %v6987_v8  ;;  %v5432_v0 = vpop.f32.mrf.mxu0 }
 0x19c   : > { %v5382_v45 = vpop.f32.mrf.mxu1 }
 0x19d   : > { %v7089_v31 = vadd.f32 %v2811_v48, %v2507_v28  ;;  %v2510_v24 = vadd.f32 %v5382_v45, %v6990_v17  ;;  %v2821_v20 = vpop.f32.mrf.mxu0 }
 0x19e   : > { %v2430_v51 = vpop.f32.mrf.mxu1 }
 0x19f   : > { %v7092_v7 = vadd.f32 %v5432_v0, %v2510_v24  ;;  %v2509_v1 = vadd.f32 %v2430_v51, %v6993_v43  ;;  %v5435_v39 = vpop.f32.mrf.mxu0 }
 0x1a0   : > { %v5385_v29 = vpop.f32.mrf.mxu1 }
 0x1a1   : > { %v7095_v56 = vadd.f32 %v2821_v20, %v2509_v1  ;;  %v2512_v54 = vadd.f32 %v5385_v29, %v6996_v46  ;;  %v2831_v8 = vpop.f32.mrf.mxu0 }
 0x1a2   : > { %v2440_v2 = vpop.f32.mrf.mxu1 }
 0x1a3   : > { %v7098_v36 = vadd.f32 %v5435_v39, %v2512_v54  ;;  %v2511_v61 = vadd.f32 %v2440_v2, %v6999_v5  ;;  %v5438_v17 = vpop.f32.mrf.mxu0 }
 0x1a4   : > { %v5388_v16 = vpop.f32.mrf.mxu1 }
 0x1a5   : > { %v7101_v30 = vadd.f32 %v2831_v8, %v2511_v61  ;;  %v2514_v25 = vadd.f32 %v5388_v16, %v7002_v19  ;;  %v2841_v43 = vpop.f32.mrf.mxu0  ;;  %v2490_v61 = vadd.f32 %v7023_v41, %v6930_v63  ;;  %v2492_v63 = vadd.f32 %v7033_v26, %v6936_v13 }
 0x1a6   : > { %v2450_v48 = vpop.f32.mrf.mxu1 }
 0x1a7   : > { %v7104_v28 = vadd.f32 %v5438_v17, %v2514_v25  ;;  %v2513_v45 = vadd.f32 %v2450_v48, %v7005_v52  ;;  %v5441_v46 = vpop.f32.mrf.mxu0 }
 0x1a8   : > { %v5391_v0 = vpop.f32.mrf.mxu1 }
 0x1a9   : > { %v7107_v24 = vadd.f32 %v2841_v43, %v2513_v45  ;;  %v2516_v51 = vadd.f32 %v5391_v0, %v7008_v10  ;;  %v2851_v5 = vpop.f32.mrf.mxu0  ;;  %v2881_v0 = vadd.f32 %v7025_v53, %v2490_v61  ;;  %v2883_v53 = vadd.f32 %v7035_v60, %v2492_v63 }
 0x1aa   : > { %v2460_v20 = vpop.f32.mrf.mxu1 }
 0x1ab   : > { %v7110_v1 = vadd.f32 %v5441_v46, %v2516_v51  ;;  %v2515_v29 = vadd.f32 %v2460_v20, %v7011_v4  ;;  %v5444_v19 = vpop.f32.mrf.mxu0  ;;  %v2489_v4 = vadd.f32 %v7029_v6, %v6933_v40  ;;  %v2491_v46 = vadd.f32 %v7037_v37, %v6939_v34 }
 0x1ac   : > { %v5394_v39 = vpop.f32.mrf.mxu1  ;;  %v2493_v34 = vadd.f32 %v7042_v12, %v6945_v9 }
 0x1ad   : > { %v7113_v54 = vadd.f32 %v2851_v5, %v2515_v29  ;;  %v2518_v2 = vadd.f32 %v5394_v39, %v7014_v42  ;;  %v2861_v52 = vpop.f32.mrf.mxu0  ;;  %v2880_v6 = vadd.f32 %v7031_v59, %v2489_v4  ;;  %v2882_v26 = vadd.f32 %v7039_v62, %v2491_v46 }
 0x1ae   : > { %v2470_v8 = vpop.f32.mrf.mxu1  ;;  %v2495_v62 = vadd.f32 %v7049_v18, %v6951_v35 }
 0x1af   : > { %v7118_v16 = vadd.f32 %v5444_v19, %v2518_v2  ;;  %v2517_v10 = vadd.f32 %v2470_v8, %v7017_v55  ;;  %v5447_v25 = vpop.f32.mrf.mxu0 }
 0x1b0   : > { %v5397_v17 = vpop.f32.mrf.mxu1 }
 0x1b1   : > { %v7123_v48 = vadd.f32 %v2861_v52, %v2517_v10  ;;  %v2520_v43 = vadd.f32 %v5397_v17, %v7020_v15  ;;  %v2871_v42 = vpop.f32.mrf.mxu0  ;;  %v2884_v17 = vadd.f32 %v7044_v44, %v2493_v34 }
 0x1b2   : > { %v2480_v45 = vpop.f32.mrf.mxu1 }
 0x1b3   : > { %v7129_v41 = vadd.f32 %v5447_v25, %v2520_v43  ;;  %v2519_v55 = vadd.f32 %v2480_v45, %v7027_v11  ;;  %v5502_v40 = vpop.f32.mrf.mxu0 }
 0x1b4   : > { %v5452_v51 = vpop.f32.mrf.mxu1 }
 0x1b5   : > { %v7135_v20 = vadd.f32 %v2871_v42, %v2519_v55  ;;  %v3271_v15 = vadd.f32 %v5452_v51, %v2881_v0  ;;  %v3501_v29 = vpop.f32.mrf.mxu0  ;;  %v2886_v0 = vadd.f32 %v7051_v23, %v2495_v62 }
 0x1b6   : > { %v3111_v5 = vpop.f32.mrf.mxu1 }
 0x1b7   : > { %v7138_v39 = vadd.f32 %v5502_v40, %v3271_v15  ;;  %v3270_v13 = vadd.f32 %v3111_v5, %v2880_v6  ;;  %v5505_v19 = vpop.f32.mrf.mxu0 }
 0x1b8   : > { %v5455_v11 = vpop.f32.mrf.mxu1 }
 0x1b9   : > { %5560 = vtanh.f32 %v7138_v39  ;;  %v7144_v59 = vadd.f32 %v3501_v29, %v3270_v13  ;;  %v3273_v37 = vadd.f32 %v5455_v11, %v2883_v53  ;;  %v3511_v8 = vpop.f32.mrf.mxu0 }
 0x1ba   : > { %v3121_v2 = vpop.f32.mrf.mxu1 }
 0x1bb   : > { %v7146_v52 = vadd.f32 %v5505_v19, %v3273_v37  ;;  %v3272_v60 = vadd.f32 %v3121_v2, %v2882_v26  ;;  %v5508_v10 = vpop.f32.mrf.mxu0  ;;  %5562 = vtanh.f32 %v7144_v59 }
 0x1bc   : > { %v5458_v61 = vpop.f32.mrf.mxu1 }
 0x1bd   : > { %5564 = vtanh.f32 %v7146_v52  ;;  %v7153_v9 = vadd.f32 %v3511_v8, %v3272_v60  ;;  %v3275_v12 = vadd.f32 %v5458_v61, %v7046_v38  ;;  %v3521_v4 = vpop.f32.mrf.mxu0 }
 0x1be   : > { %v3131_v25 = vpop.f32.mrf.mxu1 }
 0x1bf   : > { %v3274_v43 = vadd.f32 %v3131_v25, %v2884_v17  ;;  %v5511_v42 = vpop.f32.mrf.mxu0  ;;  %5566 = vtanh.f32 %v7153_v9  ;;  %v7160_v35 = vadd.f32 %v5508_v10, %v3275_v12 }
 0x1c0   : > { %v5461_v45 = vpop.f32.mrf.mxu1 }
 0x1c1   : > { %v7157_v63 = vadd.f32 %v3521_v4, %v3274_v43  ;;  %v3277_v44 = vadd.f32 %v5461_v45, %v7053_v21  ;;  %v3531_v55 = vpop.f32.mrf.mxu0 }
 0x1c2   : > { %v3141_v18 = vpop.f32.mrf.mxu1 }
 0x1c3   : > { %v3276_v46 = vadd.f32 %v3141_v18, %v2886_v0  ;;  %5568 = vtanh.f32 %v7157_v63  ;;  %v5514_v51 = vpop.f32.mrf.mxu0  ;;  %v7167_v23 = vadd.f32 %v5511_v42, %v3277_v44 }
 0x1c4   : > { %v5464_v38 = vpop.f32.mrf.mxu1  ;;  %5570 = vtanh.f32 %v7160_v35 }
 0x1c5   : > { %v7164_v40 = vadd.f32 %v3531_v55, %v3276_v46  ;;  %v3279_v15 = vadd.f32 %v5464_v38, %v7056_v32  ;;  %v3541_v29 = vpop.f32.mrf.mxu0 }
 0x1c6   : > { %v5561_v6 = vpop.eup %5560  ;;  %v3151_v5 = vpop.f32.mrf.mxu1 }
 0x1c7   : > { %3950 = vrot.lane.b32.xlu0 %v5561_v6, %s5760_s11  ;;  %5572 = vtanh.f32 %v7164_v40  ;;  %v3278_v21 = vadd.f32 %v3151_v5, %v7059_v49  ;;  %v5517_v13 = vpop.f32.mrf.mxu0  ;;  %v7174_v11 = vadd.f32 %v5514_v51, %v3279_v15 }
 0x1c8   : > { %v5467_v53 = vpop.f32.mrf.mxu1  ;;  %v5563_v26 = vpop.eup %5562  ;;  %5574 = vtanh.f32 %v7167_v23 }
 0x1c9   : > { %v3551_v34 = vpop.f32.mrf.mxu0  ;;  %v3281_v32 = vadd.f32 %v5467_v53, %v7062_v22  ;;  %v7178_v2 = vadd.f32 %v3541_v29, %v3278_v21  ;;  %5576 = vtanh.f32 %v7174_v11 }
 0x1ca   : > { %v3161_v19 = vpop.f32.mrf.mxu1  ;;  %v5565_v37 = vpop.eup %5564 }
 0x1cb   : > { %3948 = vrot.lane.b32.xlu0 %v5563_v26, %s5760_s11  ;;  %3954 = vrot.lane.b32.xlu1 %v5565_v37, %s5760_s11  ;;  %v5520_v49 = vpop.f32.mrf.mxu0  ;;  %5578 = vtanh.f32 %v7178_v2  ;;  %v3280_v17 = vadd.f32 %v3161_v19, %v7065_v50  ;;  %v7184_v62 = vadd.f32 %v5517_v13, %v3281_v32 }
 0x1cc   : > { %v5470_v8 = vpop.f32.mrf.mxu1  ;;  %v5567_v10 = vpop.eup %5566 }
 0x1cd   : > { %v3561_v61 = vpop.f32.mrf.mxu0  ;;  %v3283_v42 = vadd.f32 %v5470_v8, %v7068_v27  ;;  %5580 = vtanh.f32 %v7184_v62  ;;  %v7190_v0 = vadd.f32 %v3551_v34, %v3280_v17 }
 0x1ce   : > { %v3171_v60 = vpop.f32.mrf.mxu1 }
 0x1cf   : > { %3952 = vrot.lane.b32.xlu1 %v5567_v10, %s5760_s11  ;;  %v5523_v12 = vpop.f32.mrf.mxu0  ;;  %v3282_v51 = vadd.f32 %v3171_v60, %v7071_v3  ;;  %v7195_v6 = vadd.f32 %v5520_v49, %v3283_v42  ;;  %5582 = vtanh.f32 %v7190_v0 }
 0x1d0   : > { %v5473_v22 = vpop.f32.mrf.mxu1  ;;  %v5569_v25 = vpop.eup %5568 }
 0x1d1   : > { %3956 = vrot.lane.b32.xlu0 %v5569_v25, %s5760_s11  ;;  %v3571_v43 = vpop.f32.mrf.mxu0  ;;  %v5571_v45 = vpop.eup %5570  ;;  %v3285_v15 = vadd.f32 %v5473_v22, %v7074_v57  ;;  %5584 = vtanh.f32 %v7195_v6  ;;  %v7201_v53 = vadd.f32 %v3561_v61, %v3282_v51 }
 0x1d2   : > { %v3181_v4 = vpop.f32.mrf.mxu1 }
 0x1d3   : > { %3958 = vrot.lane.b32.xlu1 %v5571_v45, %s5760_s11  ;;  %v5526_v44 = vpop.f32.mrf.mxu0  ;;  %v3284_v13 = vadd.f32 %v3181_v4, %v7077_v33  ;;  %v7205_v26 = vadd.f32 %v5523_v12, %v3285_v15  ;;  %5586 = vtanh.f32 %v7201_v53 }
 0x1d4   : > { %v5476_v50 = vpop.f32.mrf.mxu1  ;;  %v5573_v18 = vpop.eup %5572 }
 0x1d5   : > { %3960 = vrot.lane.b32.xlu0 %v5573_v18, %s5760_s11  ;;  %v3581_v46 = vpop.f32.mrf.mxu0  ;;  %v5575_v38 = vpop.eup %5574  ;;  %v3287_v57 = vadd.f32 %v5476_v50, %v7080_v47  ;;  %v7210_v37 = vadd.f32 %v3571_v43, %v3284_v13  ;;  %5588 = vtanh.f32 %v7205_v26 }
 0x1d6   : > { %v3191_v55 = vpop.f32.mrf.mxu1  ;;  %v5577_v21 = vpop.eup %5576 }
 0x1d7   : > { %3962 = vrot.lane.b32.xlu1 %v5575_v38, %s5760_s11  ;;  %v5529_v5 = vpop.f32.mrf.mxu0  ;;  %v3286_v33 = vadd.f32 %v3191_v55, %v7083_v58  ;;  %v7215_v60 = vadd.f32 %v5526_v44, %v3287_v57  ;;  %5590 = vtanh.f32 %v7210_v37 }
 0x1d8   : > { %v5479_v27 = vpop.f32.mrf.mxu1  ;;  %v5579_v3 = vpop.eup %5578 }
 0x1d9   : > { %v3591_v34 = vpop.f32.mrf.mxu0  ;;  %3964 = vrot.lane.b32.xlu0 %v5579_v3, %s5760_s11  ;;  %v3289_v61 = vadd.f32 %v5479_v27, %v7086_v14  ;;  %v7219_v17 = vadd.f32 %v3581_v46, %v3286_v33  ;;  %5592 = vtanh.f32 %v7215_v60 }
 0x1da   : > { %v3201_v29 = vpop.f32.mrf.mxu1  ;;  %v5581_v32 = vpop.eup %5580 }
 0x1db   : > { %3966 = vrot.lane.b32.xlu1 %v5577_v21, %s5760_s11  ;;  %v5532_v49 = vpop.f32.mrf.mxu0  ;;  %v3288_v58 = vadd.f32 %v3201_v29, %v7089_v31  ;;  %v7224_v25 = vadd.f32 %v5529_v5, %v3289_v61  ;;  %5594 = vtanh.f32 %v7219_v17 }
 0x1dc   : > { %v5482_v19 = vpop.f32.mrf.mxu1  ;;  %v5583_v10 = vpop.eup %5582 }
 0x1dd   : > { %v3601_v22 = vpop.f32.mrf.mxu0  ;;  %3968 = vrot.lane.b32.xlu0 %v5583_v10, %s5760_s11  ;;  %v3291_v14 = vadd.f32 %v5482_v19, %v7092_v7  ;;  %v7229_v45 = vadd.f32 %v3591_v34, %v3288_v58  ;;  %5596 = vtanh.f32 %v7224_v25 }
 0x1de   : > { %v3211_v8 = vpop.f32.mrf.mxu1  ;;  %v5585_v12 = vpop.eup %5584 }
 0x1df   : > { %3970 = vrot.lane.b32.xlu1 %v5581_v32, %s5760_s11  ;;  %v5535_v43 = vpop.f32.mrf.mxu0  ;;  %v3290_v18 = vadd.f32 %v3211_v8, %v7095_v56  ;;  %v7234_v55 = vadd.f32 %v5532_v49, %v3291_v14  ;;  %5598 = vtanh.f32 %v7229_v45 }
 0x1e0   : > { %v5485_v47 = vpop.f32.mrf.mxu1  ;;  %v5587_v42 = vpop.eup %5586 }
 0x1e1   : > { %3972 = vrot.lane.b32.xlu0 %v5587_v42, %s5760_s11  ;;  %v3611_v31 = vpop.f32.mrf.mxu0  ;;  %v3293_v7 = vadd.f32 %v5485_v47, %v7098_v36  ;;  %5600 = vtanh.f32 %v7234_v55  ;;  %v7240_v27 = vadd.f32 %v3601_v22, %v3290_v18 }
 0x1e2   : > { %v3221_v4 = vpop.f32.mrf.mxu1  ;;  %v5589_v44 = vpop.eup %5588 }
 0x1e3   : > { %3974 = vrot.lane.b32.xlu1 %v5585_v12, %s5760_s11  ;;  %v5538_v51 = vpop.f32.mrf.mxu0  ;;  %v3292_v56 = vadd.f32 %v3221_v4, %v7101_v30  ;;  %v7244_v5 = vadd.f32 %v5535_v43, %v3293_v7  ;;  %5602 = vtanh.f32 %v7240_v27 }
 0x1e4   : > { %v5488_v50 = vpop.f32.mrf.mxu1  ;;  %v5591_v46 = vpop.eup %5590 }
 0x1e5   : > { %3976 = vrot.lane.b32.xlu0 %v5591_v46, %s5760_s11  ;;  %v3621_v21 = vpop.f32.mrf.mxu0  ;;  %v3295_v36 = vadd.f32 %v5488_v50, %v7104_v28  ;;  %v7250_v3 = vadd.f32 %v3611_v31, %v3292_v56  ;;  %5604 = vtanh.f32 %v7244_v5 }
 0x1e6   : > { %v3231_v38 = vpop.f32.mrf.mxu1  ;;  %v5593_v15 = vpop.eup %5592 }
 0x1e7   : > { %3978 = vrot.lane.b32.xlu1 %v5589_v44, %s5760_s11  ;;  %v5541_v30 = vpop.f32.mrf.mxu0  ;;  %v3294_v57 = vadd.f32 %v3231_v38, %v7107_v24  ;;  %v7255_v32 = vadd.f32 %v5538_v51, %v3295_v36  ;;  %5606 = vtanh.f32 %v7250_v3  ;;  %v4769_v36 = vmul.f32 -1.442695, %v7146_v52 }
 0x1e8   : > { %v5491_v29 = vpop.f32.mrf.mxu1  ;;  %v5595_v13 = vpop.eup %5594  ;;  %v4772_v52 = vmul.f32 -1.442695, %v7164_v40 }
 0x1e9   : > { %3980 = vrot.lane.b32.xlu0 %v5595_v13, %s5760_s11  ;;  %v3297_v28 = vadd.f32 %v5491_v29, %v7110_v1  ;;  %v3631_v49 = vpop.f32.mrf.mxu0  ;;  %v7260_v61 = vadd.f32 %v3621_v21, %v3294_v57  ;;  %5608 = vtanh.f32 %v7255_v32  ;;  %v4767_v29 = vmul.f32 -1.442695, %v7138_v39 }
 0x1ea   : > { %v5597_v19 = vpop.eup %5596  ;;  %v3241_v34 = vpop.f32.mrf.mxu1  ;;  %v4766_v21 = vmul.f32 -1.442695, %v7144_v59  ;;  %v4768_v39 = vmul.f32 -1.442695, %v7153_v9  ;;  %v4771_v59 = vmul.f32 -1.442695, %v7160_v35 }
 0x1eb   : > { %3982 = vrot.lane.b32.xlu1 %v5593_v15, %s5760_s11  ;;  %v3296_v24 = vadd.f32 %v3241_v34, %v7113_v54  ;;  %v7265_v47 = vadd.f32 %v5541_v30, %v3297_v28  ;;  %v5544_v58 = vpop.f32.mrf.mxu0  ;;  %5610 = vtanh.f32 %v7260_v61  ;;  %v4770_v30 = vmul.f32 -1.442695, %v7157_v63 }
 0x1ec   : > { %v5599_v33 = vpop.eup %5598  ;;  %v5494_v8 = vpop.f32.mrf.mxu1  ;;  %v4773_v28 = vmul.f32 -1.442695, %v7167_v23  ;;  %v4775_v63 = vmul.f32 -1.442695, %v7174_v11  ;;  %v4777_v35 = vmul.f32 -1.442695, %v7184_v62 }
 0x1ed   : > { %3984 = vrot.lane.b32.xlu0 %v5599_v33, %s5760_s11  ;;  %v3299_v12 = vadd.f32 %v5494_v8, %v7118_v16  ;;  %v7269_v4 = vadd.f32 %v3631_v49, %v3296_v24  ;;  %5612 = vtanh.f32 %v7265_v47  ;;  %v3641_v14 = vpop.f32.mrf.mxu0 }
 0x1ee   : > { %v5601_v10 = vpop.eup %5600  ;;  %v3251_v22 = vpop.f32.mrf.mxu1 }
 0x1ef   : > { %3986 = vrot.lane.b32.xlu1 %v5597_v19, %s5760_s11  ;;  %v3298_v42 = vadd.f32 %v3251_v22, %v7123_v48  ;;  %v7274_v50 = vadd.f32 %v5544_v58, %v3299_v12  ;;  %5614 = vtanh.f32 %v7269_v4  ;;  %v5547_v18 = vpop.f32.mrf.mxu0  ;;  %v4776_v58 = vmul.f32 -1.442695, %v7190_v0 }
 0x1f0   : > { %v5603_v1 = vpop.eup %5602  ;;  %v5497_v43 = vpop.f32.mrf.mxu1 }
 0x1f1   : > { %3988 = vrot.lane.b32.xlu0 %v5603_v1, %s5760_s11  ;;  %v3301_v16 = vadd.f32 %v5497_v43, %v7129_v41  ;;  %v7279_v46 = vadd.f32 %v3641_v14, %v3298_v42  ;;  %5616 = vtanh.f32 %v7274_v50  ;;  %v3651_v51 = vpop.f32.mrf.mxu0  ;;  %v4779_v43 = vmul.f32 -1.442695, %v7195_v6 }
 0x1f2   : > { %v5605_v54 = vpop.eup %5604  ;;  %v3261_v44 = vpop.f32.mrf.mxu1  ;;  %v4781_v6 = vmul.f32 -1.442695, %v7205_v26 }
 0x1f3   : > { %3990 = vrot.lane.b32.xlu1 %v5601_v10, %s5760_s11  ;;  %v3300_v48 = vadd.f32 %v3261_v44, %v7135_v20  ;;  %v7284_v38 = vadd.f32 %v5547_v18, %v3301_v16  ;;  %5618 = vtanh.f32 %v7279_v46  ;;  %v4774_v10 = vmul.f32 -1.442695, %v7178_v2 }
 0x1f4   : > { %v5607_v31 = vpop.eup %5606  ;;  %v4778_v44 = vmul.f32 -1.442695, %v7201_v53 }
 0x1f5   : > { %3992 = vrot.lane.b32.xlu0 %v5607_v31, %s5760_s11  ;;  %v7288_v41 = vadd.f32 %v3651_v51, %v3300_v48  ;;  %5620 = vtanh.f32 %v7284_v38 }
 0x1f6   : > { %v5609_v7 = vpop.eup %5608 }
 0x1f7   : > { %3994 = vrot.lane.b32.xlu1 %v5605_v54, %s5760_s11  ;;  %5622 = vtanh.f32 %v7288_v41 }
 0x1f8   : > { %v5611_v15 = vpop.eup %5610  ;;  %5624 = vpow2.f32 %v4767_v29 }
 0x1f9   : > { %3996 = vrot.lane.b32.xlu0 %v5611_v15, %s5760_s11  ;;  %5626 = vpow2.f32 %v4766_v21 }
 0x1fa   : > { %v5613_v56 = vpop.eup %5612  ;;  %5628 = vpow2.f32 %v4769_v36 }
 0x1fb   : > { %3998 = vrot.lane.b32.xlu1 %v5609_v7, %s5760_s11  ;;  %5630 = vpow2.f32 %v4768_v39 }
 0x1fc   : > { %v5615_v20 = vpop.eup %5614  ;;  %5632 = vpow2.f32 %v4770_v30 }
 0x1fd   : > { %4000 = vrot.lane.b32.xlu0 %v5615_v20, %s5760_s11  ;;  %5634 = vpow2.f32 %v4771_v59 }
 0x1fe   : > { %v5617_v13 = vpop.eup %5616  ;;  %5636 = vpow2.f32 %v4772_v52 }
 0x1ff   : > { %4002 = vrot.lane.b32.xlu1 %v5613_v56, %s5760_s11  ;;  %5638 = vpow2.f32 %v4773_v28 }
 0x200   : > { %v5619_v19 = vpop.eup %5618 }
 0x201   : > { %4004 = vrot.lane.b32.xlu0 %v5619_v19, %s5760_s11  ;;  %v4780_v19 = vmul.f32 -1.442695, %v7210_v37 }
 0x202   : > { %v5621_v34 = vpop.eup %5620 }
 0x203   : > { %4006 = vrot.lane.b32.xlu1 %v5617_v13, %s5760_s11 }
 0x204   : > { %v5623_v57 = vpop.eup %5622 }
 0x205   : > { %4008 = vrot.lane.b32.xlu0 %v5623_v57, %s5760_s11  ;;  %v5625_v33 = vpop.eup %5624  ;;  %v4783_v57 = vmul.f32 -1.442695, %v7215_v60 }
 0x206   : > { %v5627_v9 = vpop.eup %5626  ;;  %v3789_v8 = vadd.f32 1.0, %v5625_v33 }
 0x207   : > { %4010 = vrot.lane.b32.xlu1 %v5621_v34, %s5760_s11  ;;  %v5629_v49 = vpop.eup %5628  ;;  %v3788_v24 = vadd.f32 1.0, %v5627_v9 }
 0x208   : > { %5640 = vrcp.f32 %v3789_v8  ;;  %v3791_v22 = vadd.f32 1.0, %v5629_v49  ;;  %v5631_v40 = vpop.eup %5630  ;;  %v4782_v49 = vmul.f32 -1.442695, %v7219_v17 }
 0x209   : > { %5642 = vpow2.f32 %v4775_v63  ;;  %v5633_v23 = vpop.eup %5632  ;;  %v3790_v1 = vadd.f32 1.0, %v5631_v40  ;;  %v4785_v40 = vmul.f32 -1.442695, %v7224_v25  ;;  %v4784_v25 = vmul.f32 -1.442695, %v7229_v45 }
 0x20a   : > { %5644 = vpow2.f32 %v4774_v10  ;;  %v5635_v11 = vpop.eup %5634  ;;  %v3792_v12 = vadd.f32 1.0, %v5633_v23 }
 0x20b   : > { %5646 = vrcp.f32 %v3788_v24  ;;  %v5637_v2 = vpop.eup %5636  ;;  %v3793_v62 = vadd.f32 1.0, %v5635_v11 }
 0x20c   : > { %5648 = vpow2.f32 %v4777_v35  ;;  %v5639_v14 = vpop.eup %5638  ;;  %v3794_v54 = vadd.f32 1.0, %v5637_v2 }
 0x20d   : > { %5650 = vrcp.f32 %v3791_v22  ;;  %v3795_v0 = vadd.f32 1.0, %v5639_v14 }
 0x20e   : > { %5652 = vpow2.f32 %v4776_v58 }
 0x20f   : > { %5654 = vrcp.f32 %v3790_v1 }
 0x210   : > { %5656 = vrcp.f32 %v3792_v12 }
 0x211   : > { %5658 = vpow2.f32 %v4779_v43 }
 0x212   : > { %5660 = vrcp.f32 %v3793_v62 }
 0x213   : > { %5662 = vrcp.f32 %v3794_v54 }
 0x214   : > { %5664 = vrcp.f32 %v3795_v0 }
 0x215   : > { %v5641_v42 = vpop.eup %5640  ;;  %5666 = vpow2.f32 %v4778_v44 }
 0x216   : > { %v5643_v16 = vpop.eup %5642  ;;  %5668 = vpow2.f32 %v4781_v6 }
 0x217   : > { %v5645_v7 = vpop.eup %5644  ;;  %v3797_v56 = vadd.f32 1.0, %v5643_v16 }
 0x218   : > { %v5647_v48 = vpop.eup %5646  ;;  %v3796_v20 = vadd.f32 1.0, %v5645_v7 }
 0x219   : > { %v5649_v15 = vpop.eup %5648  ;;  %5670 = vrcp.f32 %v3797_v56 }
 0x21a   : > { %v5651_v53 = vpop.eup %5650  ;;  %v3799_v34 = vadd.f32 1.0, %v5649_v15  ;;  %5672 = vrcp.f32 %v3796_v20 }
 0x21b   : > { %v5653_v26 = vpop.eup %5652  ;;  %5674 = vpow2.f32 %v4780_v19 }
 0x21c   : > { %v5655_v52 = vpop.eup %5654  ;;  %v3798_v33 = vadd.f32 1.0, %v5653_v26  ;;  %5676 = vrcp.f32 %v3799_v34 }
 0x21d   : > { %v5657_v63 = vpop.eup %5656  ;;  %5678 = vpow2.f32 %v4783_v57 }
 0x21e   : > { %v5659_v60 = vpop.eup %5658  ;;  %5680 = vrcp.f32 %v3798_v33 }
 0x21f   : > { %v5661_v22 = vpop.eup %5660  ;;  %v3801_v12 = vadd.f32 1.0, %v5659_v60  ;;  %5682 = vpow2.f32 %v4782_v49 }
 0x220   : > { %v5663_v17 = vpop.eup %5662  ;;  %5684 = vpow2.f32 %v4785_v40 }
 0x221   : > { %v5665_v54 = vpop.eup %5664  ;;  %5686 = vrcp.f32 %v3801_v12 }
 0x222   : > { %v5667_v0 = vpop.eup %5666  ;;  %5688 = vpow2.f32 %v4784_v25 }
 0x223   : > { %v5669_v7 = vpop.eup %5668 }
 0x226   : > { %v5671_v45 = vpop.eup %5670 }
 0x227   : > { %v5673_v56 = vpop.eup %5672 }
 0x228   : > { %v5675_v20 = vpop.eup %5674 }
 0x239   : > { %v3951_v31 = vpop.permute.xlu0 %3950 }
 0x23a   : > { %v4045_v18 = vmul.f32 %v5641_v42, %v3951_v31 }
 0x23c   : > { %vm4077_vm3 = vcmp.ge.f32.partialorder %v4045_v18, 0.0  ;;  %v4109_v51 = vmul.f32 0.2, %v4045_v18 }
 0x23d   : > { %v3949_v29 = vpop.permute.xlu0 %3948  ;;  %v3955_v36 = vpop.permute.xlu1 %3954 }
 0x23e   : > { %v4141_v21 = vsel %vm4077_vm3, %v4045_v18, %v4109_v51  ;;  %v4044_v13 = vmul.f32 %v5647_v48, %v3949_v29  ;;  %v4047_v39 = vmul.f32 %v5651_v53, %v3955_v36  ;;  %v4787_v18 = vmul.f32 -1.442695, %v7234_v55  ;;  %v5677_v36 = vpop.eup %5676 }
 0x23f   : > { %4174 = vst.msk [vmem:[%s7318_s17 + $0x8] sm:$0xff] %vm4172_vm2, %v4141_v21  ;;  %v3800_v51 = vadd.f32 1.0, %v5667_v0  ;;  %v3803_v21 = vadd.f32 1.0, %v5669_v7  ;;  %v4786_v55 = vmul.f32 -1.442695, %v7240_v27 }
 0x240   : > { %vm4076_vm4 = vcmp.ge.f32.partialorder %v4044_v13, 0.0  ;;  %v4108_v30 = vmul.f32 0.2, %v4044_v13  ;;  %vm4079_vm5 = vcmp.ge.f32.partialorder %v4047_v39, 0.0  ;;  %v4111_v59 = vmul.f32 0.2, %v4047_v39 }
 0x241   : > { %v3953_v9 = vpop.permute.xlu1 %3952  ;;  %5690 = vpow2.f32 %v4787_v18  ;;  %v4789_v27 = vmul.f32 -1.442695, %v7244_v5  ;;  %v4792_v18 = vmul.f32 -1.442695, %v7269_v4 }
 0x242   : > { %v4140_v28 = vsel %vm4076_vm4, %v4044_v13, %v4108_v30  ;;  %v4143_v37 = vsel %vm4079_vm5, %v4047_v39, %v4111_v59  ;;  %v4046_v8 = vmul.f32 %v5655_v52, %v3953_v9  ;;  %v5679_v39 = vpop.eup %5678  ;;  %5692 = vrcp.f32 %v3800_v51 }
 0x243   : > { %4173 = vst.msk [vmem:[%s7318_s17] sm:$0xff] %vm4172_vm2, %v4140_v28  ;;  %4176 = vst.msk [vmem:[%s7318_s17 + $0x18] sm:$0xff] %vm4172_vm2, %v4143_v37  ;;  %v3957_v10 = vpop.permute.xlu0 %3956  ;;  %v5681_v34 = vpop.eup %5680  ;;  %v3802_v30 = vadd.f32 1.0, %v5675_v20  ;;  %5694 = vrcp.f32 %v3803_v21  ;;  %v3805_v37 = vadd.f32 1.0, %v5679_v39 }
 0x244   : > { %vm4078_vm6 = vcmp.ge.f32.partialorder %v4046_v8, 0.0  ;;  %v4110_v24 = vmul.f32 0.2, %v4046_v8  ;;  %v4048_v35 = vmul.f32 %v5657_v63, %v3957_v10  ;;  %v5683_v33 = vpop.eup %5682  ;;  %5696 = vpow2.f32 %v4786_v55 }
 0x245   : > { %v3959_v58 = vpop.permute.xlu1 %3958  ;;  %5698 = vrcp.f32 %v3802_v30  ;;  %v4788_v63 = vmul.f32 -1.442695, %v7250_v3  ;;  %v3804_v10 = vadd.f32 1.0, %v5683_v33 }
 0x246   : > { %v4142_v23 = vsel %vm4078_vm6, %v4046_v8, %v4110_v24  ;;  %vm4080_vm7 = vcmp.ge.f32.partialorder %v4048_v35, 0.0  ;;  %v4112_v1 = vmul.f32 0.2, %v4048_v35  ;;  %v4049_v11 = vmul.f32 %v5661_v22, %v3959_v58  ;;  %v5685_v8 = vpop.eup %5684 }
 0x247   : > { %4175 = vst.msk [vmem:[%s7318_s17 + $0x10] sm:$0xff] %vm4172_vm2, %v4142_v23  ;;  %v3961_v2 = vpop.permute.xlu0 %3960  ;;  %5700 = vpow2.f32 %v4789_v27  ;;  %v4791_v22 = vmul.f32 -1.442695, %v7255_v32  ;;  %v3807_v58 = vadd.f32 1.0, %v5685_v8 }
 0x248   : > { %v4144_v43 = vsel %vm4080_vm7, %v4048_v35, %v4112_v1  ;;  %vm4081_vm8 = vcmp.ge.f32.partialorder %v4049_v11, 0.0  ;;  %v4113_v62 = vmul.f32 0.2, %v4049_v11  ;;  %v4050_v14 = vmul.f32 %v5663_v17, %v3961_v2  ;;  %v5687_v35 = vpop.eup %5686 }
 0x249   : > { %4177 = vst.msk [vmem:[%s7318_s17 + $0x20] sm:$0xff] %vm4172_vm2, %v4144_v43  ;;  %v3963_v42 = vpop.permute.xlu1 %3962  ;;  %5702 = vrcp.f32 %v3805_v37  ;;  %v5689_v40 = vpop.eup %5688 }
 0x24a   : > { %v4145_v31 = vsel %vm4081_vm8, %v4049_v11, %v4113_v62  ;;  %vm4082_vm9 = vcmp.ge.f32.partialorder %v4050_v14, 0.0  ;;  %v4114_v16 = vmul.f32 0.2, %v4050_v14  ;;  %v4051_v44 = vmul.f32 %v5665_v54, %v3963_v42 }
 0x24b   : > { %4178 = vst.msk [vmem:[%s7318_s17 + $0x28] sm:$0xff] %vm4172_vm2, %v4145_v31  ;;  %v3965_v13 = vpop.permute.xlu0 %3964  ;;  %5704 = vpow2.f32 %v4788_v63  ;;  %v4790_v11 = vmul.f32 -1.442695, %v7260_v61  ;;  %v3806_v2 = vadd.f32 1.0, %v5689_v40 }
 0x24c   : > { %v4146_v48 = vsel %vm4082_vm9, %v4050_v14, %v4114_v16  ;;  %vm4083_vm10 = vcmp.ge.f32.partialorder %v4051_v44, 0.0  ;;  %v4115_v6 = vmul.f32 0.2, %v4051_v44  ;;  %v4052_v26 = vmul.f32 %v5673_v56, %v3965_v13 }
 0x24d   : > { %4179 = vst.msk [vmem:[%s7318_s17 + $0x30] sm:$0xff] %vm4172_vm2, %v4146_v48  ;;  %v3967_v15 = vpop.permute.xlu1 %3966  ;;  %5706 = vrcp.f32 %v3804_v10  ;;  %v4793_v14 = vmul.f32 -1.442695, %v7265_v47  ;;  %v4795_v56 = vmul.f32 -1.442695, %v7274_v50 }
 0x24e   : > { %v4147_v29 = vsel %vm4083_vm10, %v4051_v44, %v4115_v6  ;;  %v4053_v53 = vmul.f32 %v5671_v45, %v3967_v15  ;;  %vm4084_vm12 = vcmp.ge.f32.partialorder %v4052_v26, 0.0  ;;  %v4116_v57 = vmul.f32 0.2, %v4052_v26  ;;  %v5691_v12 = vpop.eup %5690 }
 0x24f   : > { %4180 = vst.msk [vmem:[%s7318_s17 + $0x38] sm:$0xff] %vm4172_vm2, %v4147_v29  ;;  %v3969_v5 = vpop.permute.xlu0 %3968  ;;  %5708 = vpow2.f32 %v4791_v22  ;;  %v5693_v43 = vpop.eup %5692  ;;  %v3809_v0 = vadd.f32 1.0, %v5691_v12 }
 0x250   : > { %vm4085_vm11 = vcmp.ge.f32.partialorder %v4053_v53, 0.0  ;;  %v4117_v19 = vmul.f32 0.2, %v4053_v53  ;;  %v4148_v28 = vsel %vm4084_vm12, %v4052_v26, %v4116_v57  ;;  %v4054_v60 = vmul.f32 %v5681_v34, %v3969_v5  ;;  %v5695_v42 = vpop.eup %5694 }
 0x251   : > { %v3971_v52 = vpop.permute.xlu1 %3970  ;;  %4181 = vst.msk [vmem:[%s7318_s17 + $0x40] sm:$0xff] %vm4172_vm2, %v4148_v28  ;;  %5710 = vrcp.f32 %v3807_v58  ;;  %v5697_v31 = vpop.eup %5696  ;;  %v4794_v26 = vmul.f32 -1.442695, %v7279_v46 }
 0x252   : > { %v4149_v59 = vsel %vm4085_vm11, %v4053_v53, %v4117_v19  ;;  %v4055_v9 = vmul.f32 %v5677_v36, %v3971_v52  ;;  %vm4086_vm14 = vcmp.ge.f32.partialorder %v4054_v60, 0.0  ;;  %v4118_v23 = vmul.f32 0.2, %v4054_v60  ;;  %v5699_v7 = vpop.eup %5698 }
 0x253   : > { %4182 = vst.msk [vmem:[%s7318_s17 + $0x48] sm:$0xff] %vm4172_vm2, %v4149_v59  ;;  %v3973_v62 = vpop.permute.xlu0 %3972  ;;  %5712 = vpow2.f32 %v4790_v11  ;;  %v3808_v51 = vadd.f32 1.0, %v5697_v31  ;;  %v4797_v59 = vmul.f32 -1.442695, %v7284_v38 }
 0x254   : > { %vm4087_vm13 = vcmp.ge.f32.partialorder %v4055_v9, 0.0  ;;  %v4119_v49 = vmul.f32 0.2, %v4055_v9  ;;  %v4150_v17 = vsel %vm4086_vm14, %v4054_v60, %v4118_v23  ;;  %v4056_v54 = vmul.f32 %v5693_v43, %v3973_v62  ;;  %v5701_v45 = vpop.eup %5700 }
 0x255   : > { %v3975_v3 = vpop.permute.xlu1 %3974  ;;  %4183 = vst.msk [vmem:[%s7318_s17 + $0x50] sm:$0xff] %vm4172_vm2, %v4150_v17  ;;  %5714 = vrcp.f32 %v3806_v2  ;;  %v3811_v55 = vadd.f32 1.0, %v5701_v45 }
 0x256   : > { %v4151_v24 = vsel %vm4087_vm13, %v4055_v9, %v4119_v49  ;;  %v4057_v1 = vmul.f32 %v5687_v35, %v3975_v3  ;;  %vm4088_vm0 = vcmp.ge.f32.partialorder %v4056_v54, 0.0  ;;  %v4120_v16 = vmul.f32 0.2, %v4056_v54  ;;  %v5703_v53 = vpop.eup %5702 }
 0x257   : > { %4184 = vst.msk [vmem:[%s7318_s17 + $0x58] sm:$0xff] %vm4172_vm2, %v4151_v24  ;;  %5716 = vpow2.f32 %v4793_v14  ;;  %v3977_v48 = vpop.permute.xlu0 %3976  ;;  %v4796_v49 = vmul.f32 -1.442695, %v7288_v41 }
 0x258   : > { %vm4089_vm15 = vcmp.ge.f32.partialorder %v4057_v1, 0.0  ;;  %v4121_v32 = vmul.f32 0.2, %v4057_v1  ;;  %v4152_v47 = vsel %vm4088_vm0, %v4056_v54, %v4120_v16  ;;  %5718 = vrcp.f32 %v3809_v0  ;;  %v5705_v21 = vpop.eup %5704 }
 0x259   : > { %v3979_v61 = vpop.permute.xlu1 %3978  ;;  %4185 = vst.msk [vmem:[%s7318_s17 + $0x60] sm:$0xff] %vm4172_vm2, %v4152_v47  ;;  %v4058_v15 = vmul.f32 %v5699_v7, %v3977_v48  ;;  %5720 = vpow2.f32 %v4792_v18  ;;  %v3810_v57 = vadd.f32 1.0, %v5705_v21 }
 0x25a   : > { %v4153_v25 = vsel %vm4089_vm15, %v4057_v1, %v4121_v32  ;;  %v4059_v44 = vmul.f32 %v5695_v42, %v3979_v61  ;;  %v5707_v36 = vpop.eup %5706  ;;  %5722 = vrcp.f32 %v3808_v51 }
 0x25b   : > { %4186 = vst.msk [vmem:[%s7318_s17 + $0x68] sm:$0xff] %vm4172_vm2, %v4153_v25  ;;  %vm4090_vm3 = vcmp.ge.f32.partialorder %v4058_v15, 0.0  ;;  %v4122_v4 = vmul.f32 0.2, %v4058_v15  ;;  %v3981_v39 = vpop.permute.xlu0 %3980  ;;  %5724 = vpow2.f32 %v4795_v56 }
 0x25c   : > { %vm4091_vm1 = vcmp.ge.f32.partialorder %v4059_v44, 0.0  ;;  %v4123_v6 = vmul.f32 0.2, %v4059_v44  ;;  %v4060_v50 = vmul.f32 %v5707_v36, %v3981_v39  ;;  %v5709_v30 = vpop.eup %5708  ;;  %5726 = vrcp.f32 %v3811_v55 }
 0x25d   : > { %v3983_v20 = vpop.permute.xlu1 %3982  ;;  %v4154_v19 = vsel %vm4090_vm3, %v4058_v15, %v4122_v4  ;;  %5728 = vpow2.f32 %v4794_v26  ;;  %v3813_v37 = vadd.f32 1.0, %v5709_v30 }
 0x25e   : > { %v4155_v29 = vsel %vm4091_vm1, %v4059_v44, %v4123_v6  ;;  %v4061_v13 = vmul.f32 %v5703_v53, %v3983_v20  ;;  %4187 = vst.msk [vmem:[%s7318_s17 + $0x70] sm:$0xff] %vm4172_vm2, %v4154_v19  ;;  %v5711_v27 = vpop.eup %5710  ;;  %vm4092_vm5 = vcmp.ge.f32.partialorder %v4060_v50, 0.0  ;;  %v4124_v52 = vmul.f32 0.2, %v4060_v50 }
 0x25f   : > { %4188 = vst.msk [vmem:[%s7318_s17 + $0x78] sm:$0xff] %vm4172_vm2, %v4155_v29  ;;  %5730 = vrcp.f32 %v3810_v57  ;;  %v3985_v38 = vpop.permute.xlu0 %3984 }
 0x260   : > { %vm4093_vm4 = vcmp.ge.f32.partialorder %v4061_v13, 0.0  ;;  %v4125_v34 = vmul.f32 0.2, %v4061_v13  ;;  %v5713_v9 = vpop.eup %5712  ;;  %v4156_v8 = vsel %vm4092_vm5, %v4060_v50, %v4124_v52  ;;  %5732 = vpow2.f32 %v4797_v59 }
 0x261   : > { %v3987_v46 = vpop.permute.xlu1 %3986  ;;  %4189 = vst.msk [vmem:[%s7318_s17 + $0x80] sm:$0xff] %vm4172_vm2, %v4156_v8  ;;  %v3812_v24 = vadd.f32 1.0, %v5713_v9  ;;  %5734 = vrcp.f32 %v3813_v37 }
 0x262   : > { %v4157_v33 = vsel %vm4093_vm4, %v4061_v13, %v4125_v34  ;;  %v4063_v28 = vmul.f32 %v5711_v27, %v3987_v46  ;;  %v5715_v63 = vpop.eup %5714  ;;  %5736 = vpow2.f32 %v4796_v49 }
 0x263   : > { %4190 = vst.msk [vmem:[%s7318_s17 + $0x88] sm:$0xff] %vm4172_vm2, %v4157_v33  ;;  %v4062_v5 = vmul.f32 %v5715_v63, %v3985_v38  ;;  %5738 = vrcp.f32 %v3812_v24  ;;  %v3989_v12 = vpop.permute.xlu0 %3988 }
 0x264   : > { %vm4095_vm6 = vcmp.ge.f32.partialorder %v4063_v28, 0.0  ;;  %v4127_v10 = vmul.f32 0.2, %v4063_v28  ;;  %v5717_v60 = vpop.eup %5716 }
 0x265   : > { %v5719_v22 = vpop.eup %5718  ;;  %vm4094_vm7 = vcmp.ge.f32.partialorder %v4062_v5, 0.0  ;;  %v4126_v40 = vmul.f32 0.2, %v4062_v5  ;;  %v3991_v58 = vpop.permute.xlu1 %3990  ;;  %v3815_v3 = vadd.f32 1.0, %v5717_v60 }
 0x266   : > { %v4159_v35 = vsel %vm4095_vm6, %v4063_v28, %v4127_v10  ;;  %v4065_v41 = vmul.f32 %v5719_v22, %v3991_v58  ;;  %v5721_v23 = vpop.eup %5720 }
 0x267   : > { %4192 = vst.msk [vmem:[%s7318_s17 + $0x98] sm:$0xff] %vm4172_vm2, %v4159_v35  ;;  %v4158_v1 = vsel %vm4094_vm7, %v4062_v5, %v4126_v40  ;;  %v5723_v17 = vpop.eup %5722  ;;  %v3814_v32 = vadd.f32 1.0, %v5721_v23  ;;  %5740 = vrcp.f32 %v3815_v3  ;;  %v3993_v44 = vpop.permute.xlu0 %3992 }
 0x268   : > { %4191 = vst.msk [vmem:[%s7318_s17 + $0x90] sm:$0xff] %vm4172_vm2, %v4158_v1  ;;  %vm4097_vm8 = vcmp.ge.f32.partialorder %v4065_v41, 0.0  ;;  %v4129_v11 = vmul.f32 0.2, %v4065_v41  ;;  %v5725_v2 = vpop.eup %5724  ;;  %v4064_v43 = vmul.f32 %v5723_v17, %v3989_v12 }
 0x269   : > { %v5727_v14 = vpop.eup %5726  ;;  %v3995_v25 = vpop.permute.xlu1 %3994  ;;  %v3817_v0 = vadd.f32 1.0, %v5725_v2  ;;  %5742 = vrcp.f32 %v3814_v32 }
 0x26a   : > { %v4161_v62 = vsel %vm4097_vm8, %v4065_v41, %v4129_v11  ;;  %vm4096_vm9 = vcmp.ge.f32.partialorder %v4064_v43, 0.0  ;;  %v4128_v54 = vmul.f32 0.2, %v4064_v43  ;;  %v5729_v42 = vpop.eup %5728  ;;  %v4067_v61 = vmul.f32 %v5727_v14, %v3995_v25 }
 0x26b   : > { %4194 = vst.msk [vmem:[%s7318_s17 + $0xa8] sm:$0xff] %vm4172_vm2, %v4161_v62  ;;  %v3816_v47 = vadd.f32 1.0, %v5729_v42  ;;  %5744 = vrcp.f32 %v3817_v0  ;;  %v3997_v21 = vpop.permute.xlu0 %3996 }
 0x26c   : > { %v4160_v31 = vsel %vm4096_vm9, %v4064_v43, %v4128_v54  ;;  %v5731_v16 = vpop.eup %5730  ;;  %vm4099_vm10 = vcmp.ge.f32.partialorder %v4067_v61, 0.0  ;;  %v4131_v18 = vmul.f32 0.2, %v4067_v61 }
 0x26d   : > { %4193 = vst.msk [vmem:[%s7318_s17 + $0xa0] sm:$0xff] %vm4172_vm2, %v4160_v31  ;;  %v5733_v7 = vpop.eup %5732  ;;  %v4066_v48 = vmul.f32 %v5731_v16, %v3993_v44  ;;  %v3999_v15 = vpop.permute.xlu1 %3998  ;;  %5746 = vrcp.f32 %v3816_v47 }
 0x26e   : > { %v4163_v6 = vsel %vm4099_vm10, %v4067_v61, %v4131_v18  ;;  %v5735_v45 = vpop.eup %5734  ;;  %v3819_v29 = vadd.f32 1.0, %v5733_v7 }
 0x26f   : > { %vm4098_vm11 = vcmp.ge.f32.partialorder %v4066_v48, 0.0  ;;  %v4130_v51 = vmul.f32 0.2, %v4066_v48  ;;  %4196 = vst.msk [vmem:[%s7318_s17 + $0xb8] sm:$0xff] %vm4172_vm2, %v4163_v6  ;;  %v5737_v56 = vpop.eup %5736  ;;  %v4069_v53 = vmul.f32 %v5735_v45, %v3999_v15  ;;  %v4001_v59 = vpop.permute.xlu0 %4000 }
 0x270   : > { %v5739_v20 = vpop.eup %5738  ;;  %v3818_v13 = vadd.f32 1.0, %v5737_v56  ;;  %5748 = vrcp.f32 %v3819_v29 }
 0x271   : > { %v4162_v4 = vsel %vm4098_vm11, %v4066_v48, %v4130_v51  ;;  %vm4101_vm12 = vcmp.ge.f32.partialorder %v4069_v53, 0.0  ;;  %v4133_v55 = vmul.f32 0.2, %v4069_v53  ;;  %v4068_v36 = vmul.f32 %v5739_v20, %v3997_v21  ;;  %v4003_v50 = vpop.permute.xlu1 %4002 }
 0x272   : > { %4195 = vst.msk [vmem:[%s7318_s17 + $0xb0] sm:$0xff] %vm4172_vm2, %v4162_v4  ;;  %5750 = vrcp.f32 %v3818_v13 }
 0x273   : > { %v4165_v26 = vsel %vm4101_vm12, %v4069_v53, %v4133_v55  ;;  %vm4100_vm13 = vcmp.ge.f32.partialorder %v4068_v36, 0.0  ;;  %v4132_v39 = vmul.f32 0.2, %v4068_v36  ;;  %v4005_v49 = vpop.permute.xlu0 %4004 }
 0x274   : > { %v5741_v19 = vpop.eup %5740  ;;  %4198 = vst.msk [vmem:[%s7318_s17 + $0xc8] sm:$0xff] %vm4172_vm2, %v4165_v26 }
 0x275   : > { %v4071_v34 = vmul.f32 %v5741_v19, %v4003_v50  ;;  %v4164_v30 = vsel %vm4100_vm13, %v4068_v36, %v4132_v39  ;;  %v4007_v9 = vpop.permute.xlu1 %4006 }
 0x276   : > { %v5743_v57 = vpop.eup %5742  ;;  %4197 = vst.msk [vmem:[%s7318_s17 + $0xc0] sm:$0xff] %vm4172_vm2, %v4164_v30 }
 0x277   : > { %vm4103_vm14 = vcmp.ge.f32.partialorder %v4071_v34, 0.0  ;;  %v4135_v27 = vmul.f32 0.2, %v4071_v34  ;;  %v4070_v52 = vmul.f32 %v5743_v57, %v4001_v59  ;;  %v4009_v41 = vpop.permute.xlu0 %4008 }
 0x278   : > { %v5745_v46 = vpop.eup %5744 }
 0x279   : > { %v4167_v33 = vsel %vm4103_vm14, %v4071_v34, %v4135_v27  ;;  %vm4102_vm15 = vcmp.ge.f32.partialorder %v4070_v52, 0.0  ;;  %v4134_v28 = vmul.f32 0.2, %v4070_v52  ;;  %v4073_v37 = vmul.f32 %v5745_v46, %v4007_v9  ;;  %v4011_v35 = vpop.permute.xlu1 %4010 }
 0x27a   : > { %4200 = vst.msk [vmem:[%s7318_s17 + $0xd8] sm:$0xff] %vm4172_vm2, %v4167_v33  ;;  %v5747_v63 = vpop.eup %5746 }
 0x27b   : > { %v4166_v8 = vsel %vm4102_vm15, %v4070_v52, %v4134_v28  ;;  %vm4105_vm0 = vcmp.ge.f32.partialorder %v4073_v37, 0.0  ;;  %v4137_v38 = vmul.f32 0.2, %v4073_v37  ;;  %v4072_v10 = vmul.f32 %v5747_v63, %v4005_v49 }
 0x27c   : > { %4199 = vst.msk [vmem:[%s7318_s17 + $0xd0] sm:$0xff] %vm4172_vm2, %v4166_v8 }
 0x27d   : > { %v4169_v5 = vsel %vm4105_vm0, %v4073_v37, %v4137_v38  ;;  %v5749_v60 = vpop.eup %5748  ;;  %vm4104_vm1 = vcmp.ge.f32.partialorder %v4072_v10, 0.0  ;;  %v4136_v24 = vmul.f32 0.2, %v4072_v10 }
 0x27e   : > { %4202 = vst.msk [vmem:[%s7318_s17 + $0xe8] sm:$0xff] %vm4172_vm2, %v4169_v5  ;;  %v4075_v22 = vmul.f32 %v5749_v60, %v4011_v35 }
 0x27f   : > { %v4168_v40 = vsel %vm4104_vm1, %v4072_v10, %v4136_v24  ;;  %v5751_v58 = vpop.eup %5750 }
 0x280   : > { %4201 = vst.msk [vmem:[%s7318_s17 + $0xe0] sm:$0xff] %vm4172_vm2, %v4168_v40  ;;  %vm4107_vm3 = vcmp.ge.f32.partialorder %v4075_v22, 0.0  ;;  %v4139_v23 = vmul.f32 0.2, %v4075_v22  ;;  %v4074_v3 = vmul.f32 %v5751_v58, %v4009_v41 }
 0x282   : > { %v4171_v1 = vsel %vm4107_vm3, %v4075_v22, %v4139_v23  ;;  %vm4106_vm4 = vcmp.ge.f32.partialorder %v4074_v3, 0.0  ;;  %v4138_v11 = vmul.f32 0.2, %v4074_v3 }
 0x283   : > { %4204 = vst.msk [vmem:[%s7318_s17 + $0xf8] sm:$0xff] %vm4172_vm2, %v4171_v1 }
 0x284   : > { %v4170_v17 = vsel %vm4106_vm4, %v4074_v3, %v4138_v11 }
 0x285   : > { %4203 = vst.msk [vmem:[%s7318_s17 + $0xf0] sm:$0xff] %vm4172_vm2, %v4170_v17 }
 0x286 PF: > { %s13_s12 = sadd.s32 1, %s5758_s12  }
 0x287   : > { %p10_p4 = scmp.ge.s32.totalorder %s13_s12, 4  }
 0x289   :  { %12 = sbr.rel (!%p10_p4) target bundleno = 1 (0x1), region = 72 }

</bundles_post_ra>
